<compile_context>
chip_gen: v7x
topology: tpu7x:2x2x1
jax: 0.10.0
libtpu: 0.0.40
codegen_flags: <defaults>
</compile_context>

<pallas_src>
import functools

import jax
import jax.numpy as jnp
from jax import lax
from jax.experimental import pallas as pl
from jax.experimental.pallas import tpu as pltpu


def _round_up(n, m):
    return ((n + m - 1) // m) * m


def _classifier_kernel(x_ref, w1_ref, b1_ref, w2_ref, b2_ref, o_ref, acc_ref,
                       *, td, w1_resident):
    k = pl.program_id(1)

    @pl.when(k == 0)
    def _():
        acc_ref[...] = jnp.zeros_like(acc_ref)

    # fc1 partial product on the MXU: (TB, TD) @ (TD, H), f32 accumulation.
    # x is cast to bf16 here (in-register), so HBM only carries the caller dtype.
    x_bf = x_ref[...].astype(jnp.bfloat16)
    if w1_resident:
        # Whole (Dp, H) fc1 weight is VMEM-resident; slice the current K chunk.
        k_off = pl.multiple_of(k * td, td)
        w1_blk = w1_ref[pl.ds(k_off, td), :]
    else:
        w1_blk = w1_ref[...]
    acc_ref[...] += jnp.dot(x_bf, w1_blk, preferred_element_type=jnp.float32)

    @pl.when(k == pl.num_programs(1) - 1)
    def _():
        # bias + ReLU (VPU).  Dropout(p=0.5) is identity in eval mode.
        h = jnp.maximum(acc_ref[...] + b1_ref[...], 0.0)            # (TB, H)

        # fc2 + 2-class softmax: only the logit difference matters.
        #   d  = l1 - l0 = sum(h * (w2[1] - w2[0])) + (b2[1] - b2[0])
        #   softmax([l0, l1]) = [1 - sigmoid(d), sigmoid(d)]
        dw = w2_ref[1:2, :] - w2_ref[0:1, :]                        # (1, H)
        db = b2_ref[0:1, 1:2] - b2_ref[0:1, 0:1]                    # (1, 1)
        d = jnp.sum(h * dw, axis=-1, keepdims=True) + db            # (TB, 1)
        p1 = 1.0 / (1.0 + jnp.exp(-d))                              # one exp/row
        p0 = 1.0 - p1
        col = lax.broadcasted_iota(jnp.int32, (acc_ref.shape[0], 2), 1)
        o_ref[...] = jnp.where(col == 0, p0, p1).astype(o_ref.dtype)


@functools.partial(jax.jit, static_argnames=("tb", "td", "w1_resident"))
def text_classifier_forward(x, w1, b1, w2, b2, *, tb=512, td=4096,
                            w1_resident=None):
    """x: (B, D) f32 or bf16.  w1: (128, D), b1: (128,), w2: (2, 128), b2: (2,)
    (PyTorch nn.Linear layouts).  Returns softmax probabilities (B, 2) f32."""
    B, D = x.shape
    H = w1.shape[0]          # 128
    C = w2.shape[0]          # 2

    # Batch tile: multiple of 16 (bf16 sublane packing); keep n_b >= 2 when
    # possible so both TensorCores get work under the "parallel" batch axis.
    TB = min(_round_up(tb, 16), _round_up(B, 16))
    Bp = _round_up(B, TB)
    if Bp // TB == 1 and B > 16:
        TB = _round_up((B + 1) // 2, 16)
        Bp = _round_up(B, TB)

    # K tile: multiple of 128; prefer one that divides round_up(D, 128) so no
    # padded K columns get streamed from HBM.
    D128 = _round_up(D, 128)
    TD = min(_round_up(td, 128), D128)
    if D128 % TD != 0:
        n_units = D128 // 128
        best = 128
        for dunits in range(TD // 128, 0, -1):
            if n_units % dunits == 0:
                best = dunits * 128
                break
        if best >= TD // 2:
            TD = best
    Dp = _round_up(D128, TD)

    n_b = Bp // TB
    n_k = Dp // TD

    # VMEM budget: x double-buffered, w1 (resident or per-K, double-buffered),
    # f32 accumulator, small params / output.  Limit is set explicitly so the
    # same tiling works on v5e (16 MiB default) as well as v6e / v7x.
    VMEM_CAP = 44 << 20
    x_bufs = 2 * TB * TD * x.dtype.itemsize
    fixed = TB * H * 4 + 2 * TB * 128 * 4 + 2 * 4 * (H + C * H + C) + (1 << 20)
    w1_full = Dp * H * 2
    if w1_resident is None:
        w1_resident = (x_bufs + 2 * w1_full + fixed) <= VMEM_CAP
    w1_bufs = 2 * (w1_full if w1_resident else TD * H * 2)
    vmem_est = x_bufs + w1_bufs + fixed
    if vmem_est > VMEM_CAP:
        raise ValueError(f"tile sizes need ~{vmem_est >> 20} MiB VMEM; shrink tb/td")
    vmem_limit = min(max(vmem_est + (8 << 20), 16 << 20), 48 << 20)

    # Pad x (caller dtype, only if needed) and build the (Dp, H) bf16 fc1 weight
    # once -- tiny next to the x stream.
    if Bp != B or Dp != D:
        x = jnp.pad(x, ((0, Bp - B), (0, Dp - D)))
    w1t = w1.astype(jnp.bfloat16).T                       # (D, H): natural [K, N] MXU feed
    if Dp != D:
        w1t = jnp.pad(w1t, ((0, Dp - D), (0, 0)))

    b1_r = b1.reshape(1, H).astype(jnp.float32)
    w2_r = w2.astype(jnp.float32)
    b2_r = b2.reshape(1, C).astype(jnp.float32)

    if w1_resident:
        w1_spec = pl.BlockSpec((Dp, H), lambda i, k: (0, 0))   # DMA'd once, stays resident
    else:
        w1_spec = pl.BlockSpec((TD, H), lambda i, k: (k, 0))

    cost = pl.CostEstimate(
        flops=2 * Bp * Dp * H + 2 * Bp * H,
        transcendentals=Bp,
        bytes_accessed=(Bp * Dp * x.dtype.itemsize
                        + w1t.size * 2 * (1 if w1_resident else n_b)
                        + (b1_r.size + w2_r.size + b2_r.size) * 4
                        + Bp * C * 4),
    )

    kernel = functools.partial(_classifier_kernel, td=TD, w1_resident=w1_resident)

    out = pl.pallas_call(
        kernel,
        out_shape=jax.ShapeDtypeStruct((Bp, C), jnp.float32),
        grid=(n_b, n_k),
        in_specs=[
            pl.BlockSpec((TB, TD), lambda i, k: (i, k)),   # x tile (caller dtype)
            w1_spec,                                       # fc1 weight, (Dp|TD, H) bf16
            pl.BlockSpec((1, H), lambda i, k: (0, 0)),     # b1 (grid-invariant)
            pl.BlockSpec((C, H), lambda i, k: (0, 0)),     # w2 (grid-invariant)
            pl.BlockSpec((1, C), lambda i, k: (0, 0)),     # b2 (grid-invariant)
        ],
        out_specs=pl.BlockSpec((TB, C), lambda i, k: (i, 0)),
        scratch_shapes=[pltpu.VMEM((TB, H), jnp.float32)],
        compiler_params=pltpu.CompilerParams(
            dimension_semantics=("parallel", "arbitrary"),
            vmem_limit_bytes=vmem_limit),
        cost_estimate=cost,
    )(x, w1t, b1_r, w2_r, b2_r)

    return out[:B]


if __name__ == "__main__":
    B = 512        # batch
    D = 512        # input_dim (TF-IDF vocab size) -- small demo size
    H = 128
    C = 2

    key = jax.random.PRNGKey(0)
    kx, k1, k2, k3, k4 = jax.random.split(key, 5)

    x = jax.random.uniform(kx, (B, D), dtype=jnp.float32)

    # Deterministic PyTorch-style Linear init: U(-1/sqrt(fan_in), 1/sqrt(fan_in))
    bound1 = 1.0 / float(jnp.sqrt(jnp.float32(D)))
    w1 = jax.random.uniform(k1, (H, D), jnp.float32, -bound1, bound1)
    b1 = jax.random.uniform(k2, (H,), jnp.float32, -bound1, bound1)
    bound2 = 1.0 / float(jnp.sqrt(jnp.float32(H)))
    w2 = jax.random.uniform(k3, (C, H), jnp.float32, -bound2, bound2)
    b2 = jax.random.uniform(k4, (C,), jnp.float32, -bound2, bound2)

    # Reference (eval-mode dropout == identity), same bf16 fc1 feed / f32 acc.
    h_ref = jnp.maximum(
        jnp.dot(x.astype(jnp.bfloat16), w1.astype(jnp.bfloat16).T,
                preferred_element_type=jnp.float32) + b1, 0.0)
    ref = jax.nn.softmax(h_ref @ w2.T + b2, axis=1)

    # Small K tile so the demo exercises both grid axes (2 x 2 grid) and the
    # VMEM-resident fc1-weight path.
    out = text_classifier_forward(x, w1, b1, w2, b2, td=256)
    out = jax.block_until_ready(out)
    assert out.shape == (B, C)
    assert jnp.allclose(out, ref, atol=5e-3), "mismatch vs reference (resident w1)"
    assert jnp.allclose(jnp.sum(out, axis=1), 1.0, atol=1e-5)

    # Also exercise the per-K-tile (non-resident) fc1-weight path.
    out2 = text_classifier_forward(x, w1, b1, w2, b2, td=256, w1_resident=False)
    out2 = jax.block_until_ready(out2)
    assert jnp.allclose(out2, ref, atol=5e-3), "mismatch vs reference (tiled w1)"

    print("KERNEL_OK")
</pallas_src>

<mosaic_0001>
module attributes {stable_mosaic.version = 11 : i64} {
  func.func @_classifier_kernel(%arg0: i32, %arg1: i32, %arg2: memref<256x256xf32, #tpu.memory_space<vmem>>, %arg3: memref<512x128xbf16, #tpu.memory_space<vmem>>, %arg4: memref<1x128xf32, #tpu.memory_space<vmem>>, %arg5: memref<2x128xf32, #tpu.memory_space<vmem>>, %arg6: memref<1x2xf32, #tpu.memory_space<vmem>>, %arg7: memref<256x2xf32, #tpu.memory_space<vmem>>, %arg8: memref<256x128xf32, #tpu.memory_space<vmem>>) attributes {dimension_semantics = [#tpu.dimension_semantics<parallel>, #tpu.dimension_semantics<arbitrary>], iteration_bounds = array<i64: 2, 2>, scalar_prefetch = 0 : i64, scratch_operands = 1 : i64, tpu.core_type = #tpu.core_type<tc>, window_params = [{transform_indices = @transform_0, window_bounds = array<i64: 256, 256>}, {pipeline_mode = #tpu.pipeline_mode<synchronous>, transform_indices = @transform_1, window_bounds = array<i64: 512, 128>}, {pipeline_mode = #tpu.pipeline_mode<synchronous>, transform_indices = @transform_2, window_bounds = array<i64: 1, 128>}, {pipeline_mode = #tpu.pipeline_mode<synchronous>, transform_indices = @transform_3, window_bounds = array<i64: 2, 128>}, {pipeline_mode = #tpu.pipeline_mode<synchronous>, transform_indices = @transform_4, window_bounds = array<i64: 1, 2>}, {transform_indices = @transform_5, window_bounds = array<i64: 256, 2>}]} {
    %c0_i32 = arith.constant 0 : i32
    %0 = arith.cmpi eq, %arg1, %c0_i32 : i32
    %1 = arith.extui %0 : i1 to i32
    %c0_i32_0 = arith.constant 0 : i32
    %2 = arith.cmpi ne, %1, %c0_i32_0 : i32
    scf.if %2 {
      %cst_8 = arith.constant 0.000000e+00 : f32
      %16 = vector.broadcast %cst_8 : f32 to vector<256x128xf32>
      %c0_9 = arith.constant 0 : index
      %c0_10 = arith.constant 0 : index
      %17 = vector.load %arg8[%c0_9, %c0_10] : memref<256x128xf32, #tpu.memory_space<vmem>>, vector<256x128xf32>
      tpu.vector_store %arg8[%c0_9, %c0_10], %16 {strides = array<i32>} : memref<256x128xf32, #tpu.memory_space<vmem>>, vector<256x128xf32>,
    } else {
    }
    %c0 = arith.constant 0 : index
    %c0_1 = arith.constant 0 : index
    %3 = vector.load %arg2[%c0, %c0_1] : memref<256x256xf32, #tpu.memory_space<vmem>>, vector<256x256xf32>
    %4 = arith.truncf %3 : vector<256x256xf32> to vector<256x256xbf16>
    %c256_i32 = arith.constant 256 : i32
    %5 = arith.muli %arg1, %c256_i32 : i32
    %6 = tpu.assume_multiple %5, 256 : i32
    %7 = arith.index_cast %6 : i32 to index
    %c0_2 = arith.constant 0 : index
    %8 = vector.load %arg3[%7, %c0_2] : memref<512x128xbf16, #tpu.memory_space<vmem>>, vector<256x128xbf16>
    %c0_3 = arith.constant 0 : index
    %c0_4 = arith.constant 0 : index
    %9 = vector.load %arg8[%c0_3, %c0_4] : memref<256x128xf32, #tpu.memory_space<vmem>>, vector<256x128xf32>
    %cst = arith.constant dense<0.000000e+00> : vector<256x128xf32>
    %10 = tpu.matmul %4, %8, %cst {dimension_numbers = #tpu.dot_dimension_numbers<[1], [0], [0], [1], [0, 0, 1, 1], [], []>} : vector<256x256xbf16>, vector<256x128xbf16>, vector<256x128xf32> -> vector<256x128xf32>
    %11 = arith.addf %9, %10 : vector<256x128xf32>
    %c0_5 = arith.constant 0 : index
    %c0_6 = arith.constant 0 : index
    %12 = vector.load %arg8[%c0_5, %c0_6] : memref<256x128xf32, #tpu.memory_space<vmem>>, vector<256x128xf32>
    tpu.vector_store %arg8[%c0_5, %c0_6], %11 {strides = array<i32>} : memref<256x128xf32, #tpu.memory_space<vmem>>, vector<256x128xf32>,
    %c1_i32 = arith.constant 1 : i32
    %13 = arith.cmpi eq, %arg1, %c1_i32 : i32
    %14 = arith.extui %13 : i1 to i32
    %c0_i32_7 = arith.constant 0 : i32
    %15 = arith.cmpi ne, %14, %c0_i32_7 : i32
    scf.if %15 {
      %c0_8 = arith.constant 0 : index
      %c0_9 = arith.constant 0 : index
      %16 = vector.load %arg8[%c0_8, %c0_9] : memref<256x128xf32, #tpu.memory_space<vmem>>, vector<256x128xf32>
      %c0_10 = arith.constant 0 : index
      %c0_11 = arith.constant 0 : index
      %17 = vector.load %arg4[%c0_10, %c0_11] : memref<1x128xf32, #tpu.memory_space<vmem>>, vector<1x128xf32>
      %18 = vector.broadcast %17 : vector<1x128xf32> to vector<256x128xf32>
      %19 = arith.addf %16, %18 : vector<256x128xf32>
      %cst_12 = arith.constant 0.000000e+00 : f32
      %20 = vector.broadcast %cst_12 : f32 to vector<256x128xf32>
      %21 = arith.maximumf %19, %20 : vector<256x128xf32>
      %c1 = arith.constant 1 : index
      %c0_13 = arith.constant 0 : index
      %22 = vector.load %arg5[%c1, %c0_13] : memref<2x128xf32, #tpu.memory_space<vmem>>, vector<1x128xf32>
      %c0_14 = arith.constant 0 : index
      %c0_15 = arith.constant 0 : index
      %23 = vector.load %arg5[%c0_14, %c0_15] : memref<2x128xf32, #tpu.memory_space<vmem>>, vector<1x128xf32>
      %24 = arith.subf %22, %23 : vector<1x128xf32>
      %c0_16 = arith.constant 0 : index
      %c1_17 = arith.constant 1 : index
      %25 = vector.load %arg6[%c0_16, %c1_17] : memref<1x2xf32, #tpu.memory_space<vmem>>, vector<1x1xf32>
      %c0_18 = arith.constant 0 : index
      %c0_19 = arith.constant 0 : index
      %26 = vector.load %arg6[%c0_18, %c0_19] : memref<1x2xf32, #tpu.memory_space<vmem>>, vector<1x1xf32>
      %27 = arith.subf %25, %26 : vector<1x1xf32>
      %28 = vector.broadcast %24 : vector<1x128xf32> to vector<256x128xf32>
      %29 = arith.mulf %21, %28 : vector<256x128xf32>
      %cst_20 = arith.constant dense<0.000000e+00> : vector<256xf32>
      %30 = vector.multi_reduction <add>, %29, %cst_20 [1] : vector<256x128xf32> to vector<256xf32>
      %31 = vector.shape_cast %30 : vector<256xf32> to vector<256x1xf32>
      %32 = vector.broadcast %27 : vector<1x1xf32> to vector<256x1xf32>
      %33 = arith.addf %31, %32 : vector<256x1xf32>
      %cst_21 = arith.constant 0.000000e+00 : f32
      %34 = vector.broadcast %cst_21 : f32 to vector<256x1xf32>
      %35 = arith.subf %34, %33 : vector<256x1xf32>
      %36 = math.exp %35 : vector<256x1xf32>
      %cst_22 = arith.constant 1.000000e+00 : f32
      %37 = vector.broadcast %cst_22 : f32 to vector<256x1xf32>
      %38 = arith.addf %37, %36 : vector<256x1xf32>
      %cst_23 = arith.constant 1.000000e+00 : f32
      %39 = vector.broadcast %cst_23 : f32 to vector<256x1xf32>
      %40 = arith.divf %39, %38 : vector<256x1xf32>
      %cst_24 = arith.constant 1.000000e+00 : f32
      %41 = vector.broadcast %cst_24 : f32 to vector<256x1xf32>
      %42 = arith.subf %41, %40 : vector<256x1xf32>
      %43 = tpu.iota {dimensions = array<i32: 1>} : vector<256x2xi32>
      %c0_i32_25 = arith.constant 0 : i32
      %44 = vector.broadcast %c0_i32_25 : i32 to vector<256x2xi32>
      %45 = arith.cmpi eq, %43, %44 : vector<256x2xi32>
      %46 = vector.shape_cast %42 : vector<256x1xf32> to vector<256x1xf32>
      %47 = vector.broadcast %46 : vector<256x1xf32> to vector<256x2xf32>
      %48 = vector.shape_cast %40 : vector<256x1xf32> to vector<256x1xf32>
      %49 = vector.broadcast %48 : vector<256x1xf32> to vector<256x2xf32>
      %50 = arith.select %45, %47, %49 : vector<256x2xi1>, vector<256x2xf32>
      %c0_26 = arith.constant 0 : index
      %c0_27 = arith.constant 0 : index
      %51 = vector.load %arg7[%c0_26, %c0_27] : memref<256x2xf32, #tpu.memory_space<vmem>>, vector<256x2xf32>
      tpu.vector_store %arg7[%c0_26, %c0_27], %50 {strides = array<i32>} : memref<256x2xf32, #tpu.memory_space<vmem>>, vector<256x2xf32>,
    } else {
    }
    return
  }
  func.func @transform_0(%arg0: i32, %arg1: i32) -> (i32, i32) {
    %c0_i32 = arith.constant 0 : i32
    return %arg0, %arg1 : i32, i32
  }
  func.func @transform_1(%arg0: i32, %arg1: i32) -> (i32, i32) {
    %c0_i32 = arith.constant 0 : i32
    %c0_i32_0 = arith.constant 0 : i32
    %c0_i32_1 = arith.constant 0 : i32
    return %c0_i32, %c0_i32_0 : i32, i32
  }
  func.func @transform_2(%arg0: i32, %arg1: i32) -> (i32, i32) {
    %c0_i32 = arith.constant 0 : i32
    %c0_i32_0 = arith.constant 0 : i32
    %c0_i32_1 = arith.constant 0 : i32
    return %c0_i32, %c0_i32_0 : i32, i32
  }
  func.func @transform_3(%arg0: i32, %arg1: i32) -> (i32, i32) {
    %c0_i32 = arith.constant 0 : i32
    %c0_i32_0 = arith.constant 0 : i32
    %c0_i32_1 = arith.constant 0 : i32
    return %c0_i32, %c0_i32_0 : i32, i32
  }
  func.func @transform_4(%arg0: i32, %arg1: i32) -> (i32, i32) {
    %c0_i32 = arith.constant 0 : i32
    %c0_i32_0 = arith.constant 0 : i32
    %c0_i32_1 = arith.constant 0 : i32
    return %c0_i32, %c0_i32_0 : i32, i32
  }
  func.func @transform_5(%arg0: i32, %arg1: i32) -> (i32, i32) {
    %c0_i32 = arith.constant 0 : i32
    %c0_i32_0 = arith.constant 0 : i32
    return %arg0, %c0_i32 : i32, i32
  }
}

</mosaic_0001>

<bundles_post_ra>
// kernel: text_classifier_forward.1
= control target key start
LH: loop header
LB: loop body
LE: loop exit
PB: predicated region body
PF: predicated region fallthrough
CT: control target
= control target key end

     0   :  { %s2868_s0 = inlined_call_operand.hbm [shape: f32[512,512], index: 0, kind: input, shape index: {}]   ;;  %s2869_s1 = inlined_call_operand.vmem [shape: bf16[512,128], index: 1, kind: input, shape index: {}]   ;;  %s2870_s2 = inlined_call_operand.vmem [shape: f32[1,128], index: 2, kind: input, shape index: {}]   ;;  %s2871_s3 = inlined_call_operand.vmem [shape: f32[2,128], index: 3, kind: input, shape index: {}]   ;;  %s2872_s4 = inlined_call_operand.vmem [shape: f32[1,2], index: 4, kind: input, shape index: {}]   ;;  %s2873_s5 = inlined_call_operand.vmem [shape: f32[512,2], index: 5, kind: output, shape index: {}]  }
   0x1   :  { %2876 = sst [smem:[#allocation7_spill]] %s2871_s3 }
   0x2   :  { %10 = vsyncpa [#allocation4], 0 }
   0x3   :  { %12 = vsyncpa [#allocation4 + $0x1], 0  ;;  %s2261_s18 = smov 0   ;;  %s2263_s19 = smov 0  }
   0x4   :  { %s2265_s20 = smov 0   ;;  %s2267_s21 = smov 0  }
   0x5   :  { %s2269_s22 = smov 0   ;;  %s2271_s23 = smov 0  }
   0x6   :  { %s2273_s24 = smov 0   ;;  %s2275_s25 = smov 0  }
   0x7 LB: > { %s1738_s26 = sadd.s32 4294967295, %s2222_s25   ;;  %s27_s27 = sadd.s32 1, %s2214_s23  ;;  %s2222_s25 = sphi %s2275_s25, %s18_s25   ;;  %s2218_s24 = sphi %s2273_s24, %s2889_s24   ;;  %s2214_s23 = sphi %s2271_s23, %s2888_s23   ;;  %s2210_s22 = sphi %s2269_s22, %s2887_s22   ;;  %s2206_s21 = sphi %s2267_s21, %s2886_s21   ;;  %s2202_s20 = sphi %s2265_s20, %s2885_s20   ;;  %s2198_s19 = sphi %s2263_s19, %s2884_s19   ;;  %s2194_s18 = sphi %s2261_s18, %s2883_s18  }
   0x8   : > { %p28_p0 = scmp.ge.s32.totalorder %s27_s27, 2  ;;  %s30_s28 = sadd.s32 1, %s2218_s24 }
   0x9   : > { %s39_s29 = sadd.s32 1, %s2202_s20  ;;  %p46_p1 = scmp.ne.s32.totalorder %s2202_s20, %s2198_s19 }
   0xa   : > { %s2891_s27 = smov (%p28_p0, %s27_s27), 0  ;;  %s2893_s28 = smov (!%p28_p0, %s30_s28), %s2218_s24 }
   0xb   : > { %2877 = sst [smem:[#allocation6_spill]] %s2891_s27  ;;  %s35_s30 = ssub.s32 %s2214_s23, %s2891_s27 }
   0xc   : > { %p47_p2 = scmp.eq.s32.totalorder %s2222_s25, 0  ;;  %p32_p3 = scmp.ge.s32.totalorder %s2893_s28, 2 }
   0xd   : > { %p52_p4 = scmp.ne.s32.totalorder %s2198_s19, %s2194_s18  ;;  %p53_p6 = scmp.eq.s32.totalorder %s1738_s26, 0 }
   0xe   : > { %p2312_p5 = por %p47_p2, %p46_p1  ;;  %s2895_s28 = smov (%p32_p3, %s2893_s28), 0 }
   0xf   : > { %p2318_p7 = por %p53_p6, %p52_p4  ;;  %s34_s8 = ssub.s32 %s2218_s24, %s2895_s28 }
  0x10   : > { %p1909_p8 = scmp.lt.s32.totalorder %s2222_s25, 4  ;;  %s36_s9 = sor.u32 %s35_s30, %s34_s8 }
  0x11   : > { %s198_s10 = sand.u32 1, %s2202_s20   ;;  %p37_p9 = scmp.eq.s32.totalorder %s36_s9, 0 }
  0x12   : > { %s1742_s11 = sshll.u32 %s198_s10, 9  ;;  %s1744_s12 = sshll.u32 %s2214_s23, 1 }
  0x13   : > { %s2328_s13 = scalar_select %p37_p9, %s2202_s20, %s39_s29  }
  0x14   : > { %s1774_s14 = sshll.u32 %s2218_s24, 7  ;;  %s202_s16 = scalar_lea.vmem [#allocation3], %s1742_s11 }
  0x15   : > { %s209_s15 = sadd.s32 %s1774_s14, %s1744_s12  ;;  %s212_s17 = sshll.u32 %s202_s16, 4  ;;  %s2331_s17 = int_to_ptr.vmem [resolvable:$true] %s212_s17 }
  0x16   : > { %s1746_s18 = sshll.u32 %s209_s15, 7  ;;  %p2342_p10 = pnand %p1909_p8, %p2312_p5 }
  0x17   : > { %s2336_s3 = scalar_lea.hbm %s2868_s0, %s1746_s18  ;;  %s2346_s30 = scalar_lea.sflag [#allocation4], %s198_s10 }
  0x18   : > { %s2126_s8 = scalar_lea.hbm %s2336_s3, 8192  ;;  %p2128_p12 = pneg %p2342_p10 }
  0x19   : > { %p2127_p11 = scmp.ne.s32.totalorder %s2336_s3, %s2126_s8  ;;  %s2131_s9 = scalar_lea.hbm %s2868_s0, 32768 }
  0x1a   : > { %p2132_p1 = scmp.lt.u32.totalorder %s2336_s3, %s2868_s0  ;;  %p2133_p2 = scmp.lt.u32.totalorder %s2131_s9, %s2126_s8 }
  0x1b   : > { %p2129_p13 = pnand %p2128_p12, %p2127_p11  ;;  %p2135_p4 = scmp.lt.u32.totalorder %s2126_s8, %s2336_s3 }
  0x1c   : > { %p2134_p3 = por %p2133_p2, %p2132_p1 }
  0x1d   : > { %p2130_p0 = pneg %p2129_p13 }
  0x1e   : > { %p2136_p5 = por %p2135_p4, %p2134_p3 }
  0x20   : > { %p2137_p6 = pnand %p2136_p5, %p2130_p0 }
  0x22   : > { %2140 = shalt.err (!%p2137_p6)
}
  0x23   : > { %s2141_s10 = scalar_lea.vmem %s2331_s17, 8192  ;;  %s2224_s14 = smov [#allocation3]  }
  0x24   : > { %p2142_p8 = scmp.ne.s32.totalorder %s2331_s17, %s2141_s10  ;;  %s2146_s15 = sshll.u32 %s2224_s14, 4  ;;  %s2147_s15 = int_to_ptr.vmem [resolvable:$false] %s2146_s15 }
  0x25   : > { %s2148_s16 = scalar_lea.vmem %s2147_s15, 16384  ;;  %p2149_p13 = scmp.lt.s32.totalorder %s2331_s17, %s2147_s15 }
  0x26   : > { %p2144_p9 = pnand %p2142_p8, %p2128_p12  ;;  %p2150_p1 = scmp.lt.s32.totalorder %s2148_s16, %s2141_s10 }
  0x28   : > { %p2145_p11 = pneg %p2144_p9  ;;  %p2151_p2 = por %p2150_p1, %p2149_p13 }
  0x2a   : > { %p2152_p3 = pnand %p2151_p2, %p2145_p11 }
  0x2c   : > { %2155 = shalt.err (!%p2152_p3)
}
  0x2d   : > { %s2225_s18 = smov 512   ;;  %s2226_s26 = smov 256  }
  0x2e   : > { %s2227_s8 = smov 16   ;;  %p1747_p12 = scmp.ge.s32.totalorder %s2222_s25, 1 }
  0x2f   : > { %1908 = dma.hbm_to_vmem [thread:$0]  (!%p2342_p10), %s2336_s3, 8192, %s2331_s17, %s2346_s30, %s2225_s18, %s2226_s26, %s2227_s8  }
  0x30   : > { %p220_p0 = scmp.lt.s32.totalorder %s2222_s25, 5 }
  0x32   : > { %p221_p4 = pnand %p1747_p12, %p220_p0 }
  0x33   : > { %s226_s27 = sand.u32 (!%p221_p4), 1, %s2198_s19  }
  0x34   : > { %224 = sbr.rel (%p221_p4) target bundleno = 837 (0x345), region = 40  ;;  %s1748_s6 = sshll.u32 (!%p221_p4), %s226_s27, 9 }
  0x35   : > { %s227_s9 = scalar_lea.sflag (!%p221_p4), [#allocation4], %s226_s27  ;;  %s2377_s11 = scalar_lea.vmem (!%p221_p4), [#allocation3], %s1748_s6 }
  0x3b   : > { %2189 = dma.done.wait (%p2318_p7), %s227_s9, 8192  }
  0x3c   : > { %2191 = vsyncadd (%p2318_p7), %s227_s9, 4294959104  ;;  %s1749_s12 = sshll.u32 %s2210_s22, 5  ;;  %p1751_p10 = scmp.ne.s32.totalorder %s2206_s21, 0 }
  0x3d   : > { %p260_p5 = scmp.lt.s32.totalorder %s1749_s12, 63  ;;  %v2228_v0 = vmov (!%p1751_p10), 0.0  }
  0x3e   : > { %269 = sbr.rel (%p1751_p10) target bundleno = 78 (0x4e), region = 48  ;;  %270 = vst [vmem:[#allocation2] sm:$0xff] (!%p1751_p10), %v2228_v0  ;;  %271 = vst [vmem:[#allocation2 + $0x8] sm:$0xff] (!%p1751_p10), %v2228_v0 }
  0x3f   : > { %s2897_s12 = smov (!%p260_p5, %s1749_s12), 63  ;;  %272 = vst [vmem:[#allocation2 + $0x10] sm:$0xff] (!%p1751_p10), %v2228_v0  ;;  %273 = vst [vmem:[#allocation2 + $0x18] sm:$0xff] (!%p1751_p10), %v2228_v0 }
  0x40   : > { %s1750_s3 = sshll.u32 %s2897_s12, 3  ;;  %274 = vst [vmem:[#allocation2 + $0x20] sm:$0xff] (!%p1751_p10), %v2228_v0  ;;  %275 = vst [vmem:[#allocation2 + $0x28] sm:$0xff] (!%p1751_p10), %v2228_v0 }
  0x41   : > { %s2387_s30 = scalar_lea.vmem %s2873_s5, %s1750_s3  ;;  %276 = vst [vmem:[#allocation2 + $0x30] sm:$0xff] (!%p1751_p10), %v2228_v0  ;;  %277 = vst [vmem:[#allocation2 + $0x38] sm:$0xff] (!%p1751_p10), %v2228_v0 }
  0x42   : > { %278 = vst [vmem:[#allocation2 + $0x40] sm:$0xff] (!%p1751_p10), %v2228_v0  ;;  %279 = vst [vmem:[#allocation2 + $0x48] sm:$0xff] (!%p1751_p10), %v2228_v0 }
  0x43   : > { %280 = vst [vmem:[#allocation2 + $0x50] sm:$0xff] (!%p1751_p10), %v2228_v0  ;;  %281 = vst [vmem:[#allocation2 + $0x58] sm:$0xff] (!%p1751_p10), %v2228_v0 }
  0x44   : > { %282 = vst [vmem:[#allocation2 + $0x60] sm:$0xff] (!%p1751_p10), %v2228_v0  ;;  %283 = vst [vmem:[#allocation2 + $0x68] sm:$0xff] (!%p1751_p10), %v2228_v0 }
  0x45   : > { %284 = vst [vmem:[#allocation2 + $0x70] sm:$0xff] %v2228_v0  ;;  %285 = vst [vmem:[#allocation2 + $0x78] sm:$0xff] %v2228_v0 }
  0x46   : > { %286 = vst [vmem:[#allocation2 + $0x80] sm:$0xff] %v2228_v0  ;;  %287 = vst [vmem:[#allocation2 + $0x88] sm:$0xff] %v2228_v0 }
  0x47   : > { %288 = vst [vmem:[#allocation2 + $0x90] sm:$0xff] %v2228_v0  ;;  %289 = vst [vmem:[#allocation2 + $0x98] sm:$0xff] %v2228_v0 }
  0x48   : > { %290 = vst [vmem:[#allocation2 + $0xa0] sm:$0xff] %v2228_v0  ;;  %291 = vst [vmem:[#allocation2 + $0xa8] sm:$0xff] %v2228_v0 }
  0x49   : > { %292 = vst [vmem:[#allocation2 + $0xb0] sm:$0xff] %v2228_v0  ;;  %293 = vst [vmem:[#allocation2 + $0xb8] sm:$0xff] %v2228_v0 }
  0x4a   : > { %294 = vst [vmem:[#allocation2 + $0xc0] sm:$0xff] %v2228_v0  ;;  %295 = vst [vmem:[#allocation2 + $0xc8] sm:$0xff] %v2228_v0 }
  0x4b   : > { %296 = vst [vmem:[#allocation2 + $0xd0] sm:$0xff] %v2228_v0  ;;  %297 = vst [vmem:[#allocation2 + $0xd8] sm:$0xff] %v2228_v0 }
  0x4c   : > { %298 = vst [vmem:[#allocation2 + $0xe0] sm:$0xff] %v2228_v0  ;;  %299 = vst [vmem:[#allocation2 + $0xe8] sm:$0xff] %v2228_v0 }
  0x4d   : > { %300 = vst [vmem:[#allocation2 + $0xf0] sm:$0xff] %v2228_v0  ;;  %301 = vst [vmem:[#allocation2 + $0xf8] sm:$0xff] %v2228_v0 }
  0x4e PF: > { %s1752_s22 = sshll.u32 %s2206_s21, 8  ;;  %v303_v1 = vld [vmem:[%s2377_s11 + $0x8] sm:$0xff]  ;;  %v305_v2 = vld [vmem:[%s2377_s11 + $0x18] sm:$0xff]  ;;  %v302_v22 = vld [vmem:[%s2377_s11] sm:$0xff]  ;;  %p1770_p7 = scmp.ne.s32.totalorder %s2206_s21, 1 }
  0x4f   : > { %v335_v3 = vld [vmem:[%s2377_s11 + $0x108] sm:$0xff]  ;;  %s399_s7 = sshra.s32 %s1752_s22, 3  ;;  %v367_v4 = vpack.c.bf16 %v305_v2, %v303_v1  ;;  %v337_v5 = vld [vmem:[%s2377_s11 + $0x118] sm:$0xff]  ;;  %v304_v23 = vld [vmem:[%s2377_s11 + $0x10] sm:$0xff]  ;;  %s2229_s6 = smov (!%p1770_p7), 1   ;;  %vm1621_vm1 = vcmask (!%p1770_p7), 15360  }
  0x50   : > { %s1753_s10 = sshll.u32 %s399_s7, 2  ;;  %v383_v6 = vpack.c.bf16 %v337_v5, %v335_v3  ;;  %v334_v24 = vld [vmem:[%s2377_s11 + $0x100] sm:$0xff]  ;;  %v336_v26 = vld [vmem:[%s2377_s11 + $0x110] sm:$0xff]  ;;  %v307_v27 = vld [vmem:[%s2377_s11 + $0x28] sm:$0xff]  ;;  %v366_v31 = vpack.c.bf16 %v304_v23, %v302_v22 }
  0x51   : > { %s2398_s16 = scalar_lea.vmem %s2869_s1, %s1753_s10  ;;  %595 = vmatprep.mubr.bf16.mxu0 %v367_v4  ;;  %v309_v28 = vld [vmem:[%s2377_s11 + $0x38] sm:$0xff]  ;;  %v339_v29 = vld [vmem:[%s2377_s11 + $0x128] sm:$0xff]  ;;  %v382_v32 = vpack.c.bf16 %v336_v26, %v334_v24  ;;  %v306_v35 = vld [vmem:[%s2377_s11 + $0x20] sm:$0xff] }
  0x52   : > { %v1980_v7 = vld [vmem:[%s2398_s16 + $0x40] sm:$0xff]   ;;  %659 = vmatprep.mubr.bf16.mxu1 %v383_v6  ;;  %v1982_v9 = vld [vmem:[%s2398_s16 + $0x48] sm:$0xff]   ;;  %v1984_v11 = vld [vmem:[%s2398_s16 + $0x50] sm:$0xff]   ;;  %v369_v33 = vpack.c.bf16 %v309_v28, %v307_v27 }
  0x53   : > { %v1981_v8 = vld [vmem:[%s2398_s16] sm:$0xff]   ;;  %1775 = vmatprep.subr.bf16.mxu0 %v1980_v7  ;;  %1887 = vmatprep.subr.bf16.mxu1 %v1980_v7  ;;  %v1983_v10 = vld [vmem:[%s2398_s16 + $0x8] sm:$0xff]   ;;  %v1985_v12 = vld [vmem:[%s2398_s16 + $0x10] sm:$0xff]  }
  0x54   : > { %1776 = vmatpush3.bf16.msra.mxu0 %v1981_v8  ;;  %1895 = vmatpush3.bf16.msra.mxu1 %v1981_v8  ;;  %v1986_v13 = vld [vmem:[%s2398_s16 + $0x58] sm:$0xff]   ;;  %v1988_v15 = vld [vmem:[%s2398_s16 + $0x60] sm:$0xff]   ;;  %v1990_v17 = vld [vmem:[%s2398_s16 + $0x68] sm:$0xff]  }
  0x55   : > { %1777 = vmatprep.subr.bf16.mxu0 %v1982_v9  ;;  %1888 = vmatprep.subr.bf16.mxu1 %v1982_v9  ;;  %v1987_v14 = vld [vmem:[%s2398_s16 + $0x18] sm:$0xff]   ;;  %v1989_v16 = vld [vmem:[%s2398_s16 + $0x20] sm:$0xff]   ;;  %v1991_v18 = vld [vmem:[%s2398_s16 + $0x28] sm:$0xff]  }
  0x56   : > { %v1992_v19 = vld [vmem:[%s2398_s16 + $0x70] sm:$0xff]   ;;  %v1994_v21 = vld [vmem:[%s2398_s16 + $0x78] sm:$0xff]   ;;  %v338_v37 = vld [vmem:[%s2377_s11 + $0x120] sm:$0xff] }
  0x57   : > { %v1993_v20 = vld [vmem:[%s2398_s16 + $0x30] sm:$0xff]   ;;  %v1995_v25 = vld [vmem:[%s2398_s16 + $0x38] sm:$0xff]   ;;  %v311_v39 = vld [vmem:[%s2377_s11 + $0x48] sm:$0xff] }
  0x58   : > { %1778 = vmatpush3.bf16.msra.mxu0 %v1983_v10  ;;  %1896 = vmatpush3.bf16.msra.mxu1 %v1983_v10  ;;  %v341_v30 = vld [vmem:[%s2377_s11 + $0x138] sm:$0xff]  ;;  %v308_v36 = vld [vmem:[%s2377_s11 + $0x30] sm:$0xff]  ;;  %v343_v41 = vld [vmem:[%s2377_s11 + $0x148] sm:$0xff] }
  0x59   : > { %1779 = vmatprep.subr.bf16.mxu0 %v1984_v11  ;;  %1889 = vmatprep.subr.bf16.mxu1 %v1984_v11  ;;  %v385_v34 = vpack.c.bf16 %v341_v30, %v339_v29  ;;  %v340_v38 = vld [vmem:[%s2377_s11 + $0x130] sm:$0xff]  ;;  %v313_v40 = vld [vmem:[%s2377_s11 + $0x58] sm:$0xff]  ;;  %v368_v43 = vpack.c.bf16 %v308_v36, %v306_v35  ;;  %v310_v47 = vld [vmem:[%s2377_s11 + $0x40] sm:$0xff] }
  0x5a   : > { %v345_v42 = vld [vmem:[%s2377_s11 + $0x158] sm:$0xff]  ;;  %v384_v44 = vpack.c.bf16 %v340_v38, %v338_v37  ;;  %v371_v45 = vpack.c.bf16 %v313_v40, %v311_v39  ;;  %v312_v48 = vld [vmem:[%s2377_s11 + $0x50] sm:$0xff]  ;;  %v342_v49 = vld [vmem:[%s2377_s11 + $0x140] sm:$0xff] }
  0x5b   : > { %v387_v46 = vpack.c.bf16 %v345_v42, %v343_v41  ;;  %v344_v50 = vld [vmem:[%s2377_s11 + $0x150] sm:$0xff]  ;;  %v315_v51 = vld [vmem:[%s2377_s11 + $0x68] sm:$0xff]  ;;  %v317_v52 = vld [vmem:[%s2377_s11 + $0x78] sm:$0xff]  ;;  %v370_v55 = vpack.c.bf16 %v312_v48, %v310_v47 }
  0x5c   : > { %1780 = vmatpush3.bf16.msra.mxu0 %v1985_v12  ;;  %1897 = vmatpush3.bf16.msra.mxu1 %v1985_v12  ;;  %v347_v53 = vld [vmem:[%s2377_s11 + $0x168] sm:$0xff]  ;;  %v349_v54 = vld [vmem:[%s2377_s11 + $0x178] sm:$0xff]  ;;  %v386_v56 = vpack.c.bf16 %v344_v50, %v342_v49  ;;  %v373_v57 = vpack.c.bf16 %v317_v52, %v315_v51  ;;  %v314_v59 = vld [vmem:[%s2377_s11 + $0x60] sm:$0xff] }
  0x5d   : > { %1781 = vmatprep.subr.bf16.mxu0 %v1986_v13  ;;  %1890 = vmatprep.subr.bf16.mxu1 %v1986_v13  ;;  %v389_v58 = vpack.c.bf16 %v349_v54, %v347_v53  ;;  %v316_v60 = vld [vmem:[%s2377_s11 + $0x70] sm:$0xff]  ;;  %v346_v61 = vld [vmem:[%s2377_s11 + $0x160] sm:$0xff]  ;;  %v319_v63 = vld [vmem:[%s2377_s11 + $0x88] sm:$0xff] }
  0x5e   : > { %v348_v62 = vld [vmem:[%s2377_s11 + $0x170] sm:$0xff]  ;;  %v321_v0 = vld [vmem:[%s2377_s11 + $0x98] sm:$0xff]  ;;  %v351_v1 = vld [vmem:[%s2377_s11 + $0x188] sm:$0xff]  ;;  %v372_v3 = vpack.c.bf16 %v316_v60, %v314_v59 }
  0x5f   : > { %v353_v2 = vld [vmem:[%s2377_s11 + $0x198] sm:$0xff]  ;;  %v388_v4 = vpack.c.bf16 %v348_v62, %v346_v61  ;;  %v375_v5 = vpack.c.bf16 %v321_v0, %v319_v63  ;;  %v318_v7 = vld [vmem:[%s2377_s11 + $0x80] sm:$0xff]  ;;  %v320_v8 = vld [vmem:[%s2377_s11 + $0x90] sm:$0xff] }
  0x60   : > { %1782 = vmatpush3.bf16.msra.mxu0 %v1987_v14  ;;  %1898 = vmatpush3.bf16.msra.mxu1 %v1987_v14  ;;  %v391_v6 = vpack.c.bf16 %v353_v2, %v351_v1  ;;  %v350_v9 = vld [vmem:[%s2377_s11 + $0x180] sm:$0xff]  ;;  %v352_v10 = vld [vmem:[%s2377_s11 + $0x190] sm:$0xff]  ;;  %v323_v11 = vld [vmem:[%s2377_s11 + $0xa8] sm:$0xff] }
  0x61   : > { %1783 = vmatprep.subr.bf16.mxu0 %v1988_v15  ;;  %1891 = vmatprep.subr.bf16.mxu1 %v1988_v15  ;;  %v325_v12 = vld [vmem:[%s2377_s11 + $0xb8] sm:$0xff]  ;;  %v355_v13 = vld [vmem:[%s2377_s11 + $0x1a8] sm:$0xff]  ;;  %v374_v15 = vpack.c.bf16 %v320_v8, %v318_v7  ;;  %v356_v22 = vld [vmem:[%s2377_s11 + $0x1b0] sm:$0xff] }
  0x62   : > { %v357_v14 = vld [vmem:[%s2377_s11 + $0x1b8] sm:$0xff]  ;;  %v327_v23 = vld [vmem:[%s2377_s11 + $0xc8] sm:$0xff]  ;;  %v435_v51 = vld [vmem:[#allocation2] sm:$0xff] }
  0x63   : > { %v329_v24 = vld [vmem:[%s2377_s11 + $0xd8] sm:$0xff]  ;;  %v331_v35 = vld [vmem:[%s2377_s11 + $0xe8] sm:$0xff]  ;;  %v451_v53 = vld [vmem:[#allocation2 + $0x80] sm:$0xff] }
  0x64   : > { %1784 = vmatpush3.bf16.msra.mxu0 %v1989_v16  ;;  %1899 = vmatpush3.bf16.msra.mxu1 %v1989_v16  ;;  %v390_v16 = vpack.c.bf16 %v352_v10, %v350_v9  ;;  %v361_v26 = vld [vmem:[%s2377_s11 + $0x1d8] sm:$0xff]  ;;  %v379_v29 = vpack.c.bf16 %v329_v24, %v327_v23  ;;  %v363_v37 = vld [vmem:[%s2377_s11 + $0x1e8] sm:$0xff]  ;;  %v437_v7 = vld [vmem:[#allocation2 + $0x10] sm:$0xff] }
  0x65   : > { %1785 = vmatprep.subr.bf16.mxu0 %v1990_v17  ;;  %1892 = vmatprep.subr.bf16.mxu1 %v1990_v17  ;;  %v377_v17 = vpack.c.bf16 %v325_v12, %v323_v11  ;;  %v333_v36 = vld [vmem:[%s2377_s11 + $0xf8] sm:$0xff]  ;;  %v436_v59 = vld [vmem:[#allocation2 + $0x8] sm:$0xff]  ;;  %v453_v9 = vld [vmem:[#allocation2 + $0x90] sm:$0xff] }
  0x66   : > { %v365_v38 = vld [vmem:[%s2377_s11 + $0x1f8] sm:$0xff]  ;;  %v381_v41 = vpack.c.bf16 %v333_v36, %v331_v35  ;;  %v452_v61 = vld [vmem:[#allocation2 + $0x88] sm:$0xff] }
  0x67   : > { %v397_v42 = vpack.c.bf16 %v365_v38, %v363_v37  ;;  %v440_v35 = vld [vmem:[#allocation2 + $0x28] sm:$0xff] }
  0x68   : > { %1786 = vmatpush3.bf16.msra.mxu0 %v1991_v18  ;;  %1900 = vmatpush3.bf16.msra.mxu1 %v1991_v18  ;;  %v393_v18 = vpack.c.bf16 %v357_v14, %v355_v13  ;;  %v456_v37 = vld [vmem:[#allocation2 + $0xa8] sm:$0xff] }
  0x69   : > { %1787 = vmatprep.subr.bf16.mxu0 %v1992_v19  ;;  %1893 = vmatprep.subr.bf16.mxu1 %v1992_v19  ;;  %v322_v19 = vld [vmem:[%s2377_s11 + $0xa0] sm:$0xff] }
  0x6c   : > { %1788 = vmatpush3.bf16.msra.mxu0 %v1993_v20  ;;  %1901 = vmatpush3.bf16.msra.mxu1 %v1993_v20  ;;  %v324_v20 = vld [vmem:[%s2377_s11 + $0xb0] sm:$0xff] }
  0x6d   : > { %1789 = vmatprep.subr.bf16.mxu0 %v1994_v21  ;;  %1894 = vmatprep.subr.bf16.mxu1 %v1994_v21  ;;  %v354_v21 = vld [vmem:[%s2377_s11 + $0x1a0] sm:$0xff]  ;;  %v376_v27 = vpack.c.bf16 %v324_v20, %v322_v19 }
  0x6e   : > { %v392_v28 = vpack.c.bf16 %v356_v22, %v354_v21 }
  0x70   : > { %1790 = vmatpush3.bf16.msra.mxu0 %v1995_v25  ;;  %1902 = vmatpush3.bf16.msra.mxu1 %v1995_v25  ;;  %v359_v25 = vld [vmem:[%s2377_s11 + $0x1c8] sm:$0xff] }
  0x71   : > { %v395_v30 = vpack.c.bf16 %v361_v26, %v359_v25 }
  0x73   : > { %596 = vmatmul.mubr.bf16.vlgmr.msra.gmra.mrb[0].mxu0 %v366_v31  ;;  %660 = vmatmul.mubr.bf16.vlgmr.msra.gmra.mrb[0].mxu1 %v382_v32  ;;  %v326_v31 = vld [vmem:[%s2377_s11 + $0xc0] sm:$0xff]  ;;  %v328_v32 = vld [vmem:[%s2377_s11 + $0xd0] sm:$0xff] }
  0x74   : > { %603 = vmatprep.mubr.bf16.mxu0 %v369_v33  ;;  %667 = vmatprep.mubr.bf16.mxu1 %v385_v34  ;;  %v358_v33 = vld [vmem:[%s2377_s11 + $0x1c0] sm:$0xff]  ;;  %v360_v34 = vld [vmem:[%s2377_s11 + $0x1d0] sm:$0xff]  ;;  %v378_v39 = vpack.c.bf16 %v328_v32, %v326_v31 }
  0x75   : > { %v394_v40 = vpack.c.bf16 %v360_v34, %v358_v33 }
  0x7b   : > { %604 = vmatmul.mubr.bf16.gmra.mrb[4].mxu0 %v368_v43  ;;  %668 = vmatmul.mubr.bf16.gmra.mrb[4].mxu1 %v384_v44  ;;  %v330_v43 = vld [vmem:[%s2377_s11 + $0xe0] sm:$0xff]  ;;  %v332_v44 = vld [vmem:[%s2377_s11 + $0xf0] sm:$0xff] }
  0x7c   : > { %611 = vmatprep.mubr.bf16.mxu0 %v371_v45  ;;  %675 = vmatprep.mubr.bf16.mxu1 %v387_v46  ;;  %v362_v45 = vld [vmem:[%s2377_s11 + $0x1e0] sm:$0xff]  ;;  %v364_v46 = vld [vmem:[%s2377_s11 + $0x1f0] sm:$0xff]  ;;  %v380_v47 = vpack.c.bf16 %v332_v44, %v330_v43  ;;  %s2881_s11 = sld [smem:[#allocation7_spill]] (!%p1770_p7) }
  0x7d   : > { %v396_v48 = vpack.c.bf16 %v364_v46, %v362_v45 }
  0x83   : > { %612 = vmatmul.mubr.bf16.gmra.mrb[8].mxu0 %v370_v55  ;;  %676 = vmatmul.mubr.bf16.gmra.mrb[8].mxu1 %v386_v56 }
  0x84   : > { %619 = vmatprep.mubr.bf16.mxu0 %v373_v57  ;;  %683 = vmatprep.mubr.bf16.mxu1 %v389_v58 }
  0x8b   : > { %620 = vmatmul.mubr.bf16.gmra.mrb[12].mxu0 %v372_v3  ;;  %684 = vmatmul.mubr.bf16.gmra.mrb[12].mxu1 %v388_v4 }
  0x8c   : > { %627 = vmatprep.mubr.bf16.mxu0 %v375_v5  ;;  %691 = vmatprep.mubr.bf16.mxu1 %v391_v6 }
  0x93   : > { %628 = vmatmul.mubr.bf16.gmra.mrb[16].mxu0 %v374_v15  ;;  %692 = vmatmul.mubr.bf16.gmra.mrb[16].mxu1 %v390_v16  ;;  %v438_v15 = vld [vmem:[#allocation2 + $0x18] sm:$0xff] }
  0x94   : > { %635 = vmatprep.mubr.bf16.mxu0 %v377_v17  ;;  %699 = vmatprep.mubr.bf16.mxu1 %v393_v18  ;;  %v454_v17 = vld [vmem:[#allocation2 + $0x98] sm:$0xff] }
  0x9b   : > { %636 = vmatmul.mubr.bf16.gmra.mrb[20].mxu0 %v376_v27  ;;  %700 = vmatmul.mubr.bf16.gmra.mrb[20].mxu1 %v392_v28  ;;  %v439_v27 = vld [vmem:[#allocation2 + $0x20] sm:$0xff] }
  0x9c   : > { %643 = vmatprep.mubr.bf16.mxu0 %v379_v29  ;;  %707 = vmatprep.mubr.bf16.mxu1 %v395_v30  ;;  %v455_v29 = vld [vmem:[#allocation2 + $0xa0] sm:$0xff] }
  0xa3   : > { %644 = vmatmul.mubr.bf16.gmra.mrb[24].mxu0 %v378_v39  ;;  %708 = vmatmul.mubr.bf16.gmra.mrb[24].mxu1 %v394_v40 }
  0xa4   : > { %651 = vmatprep.mubr.bf16.mxu0 %v381_v41  ;;  %715 = vmatprep.mubr.bf16.mxu1 %v397_v42 }
  0xab   : > { %652 = vmatmul.mubr.bf16.gmra.mrb[28].mxu0 %v380_v47  ;;  %716 = vmatmul.mubr.bf16.gmra.mrb[28].mxu1 %v396_v48  ;;  %v441_v47 = vld [vmem:[#allocation2 + $0x30] sm:$0xff] }
 0x146   : > { %v1791_v49 = vpop.f32.mrb[0].mxu0  ;;  %v1839_v50 = vpop.f32.mrb[0].mxu1 }
 0x147   : > { %v1792_v52 = vpop.f32.mrb[1].mxu0  ;;  %v1840_v54 = vpop.f32.mrb[1].mxu1 }
 0x148   : > { %v1793_v55 = vadd.f32 %v1792_v52, %v1791_v49  ;;  %v1841_v56 = vadd.f32 %v1840_v54, %v1839_v50  ;;  %v1794_v57 = vpop.f32.mrb[2].mxu0  ;;  %v1842_v58 = vpop.f32.mrb[2].mxu1  ;;  %v457_v49 = vld [vmem:[#allocation2 + $0xb0] sm:$0xff] }
 0x149   : > { %v1795_v60 = vpop.f32.mrb[3].mxu0  ;;  %v1843_v62 = vpop.f32.mrb[3].mxu1 }
 0x14a   : > { %v724_v63 = vadd.f32 %v1793_v55, %v435_v51  ;;  %v740_v0 = vadd.f32 %v1841_v56, %v451_v53  ;;  %v1796_v1 = vadd.f32 %v1795_v60, %v1794_v57  ;;  %v1844_v2 = vadd.f32 %v1843_v62, %v1842_v58  ;;  %v442_v55 = vld [vmem:[#allocation2 + $0x38] sm:$0xff] }
 0x14b   : > { %v458_v57 = vld [vmem:[#allocation2 + $0xb8] sm:$0xff] }
 0x14c   : > { %756 = vst [vmem:[#allocation2] sm:$0xff] %v724_v63  ;;  %772 = vst [vmem:[#allocation2 + $0x80] sm:$0xff] %v740_v0  ;;  %v725_v3 = vadd.f32 %v1796_v1, %v436_v59  ;;  %v741_v4 = vadd.f32 %v1844_v2, %v452_v61 }
 0x14e   : > { %757 = vst [vmem:[#allocation2 + $0x8] sm:$0xff] %v725_v3  ;;  %773 = vst [vmem:[#allocation2 + $0x88] sm:$0xff] %v741_v4  ;;  %v1797_v5 = vpop.f32.mrb[4].mxu0  ;;  %v1845_v6 = vpop.f32.mrb[4].mxu1  ;;  %v443_v3 = vld [vmem:[#allocation2 + $0x40] sm:$0xff] }
 0x14f   : > { %v1798_v8 = vpop.f32.mrb[5].mxu0  ;;  %v1846_v10 = vpop.f32.mrb[5].mxu1 }
 0x150   : > { %v1799_v11 = vadd.f32 %v1798_v8, %v1797_v5  ;;  %v1847_v12 = vadd.f32 %v1846_v10, %v1845_v6  ;;  %v1800_v13 = vpop.f32.mrb[6].mxu0  ;;  %v1848_v14 = vpop.f32.mrb[6].mxu1  ;;  %v459_v5 = vld [vmem:[#allocation2 + $0xc0] sm:$0xff] }
 0x151   : > { %v1801_v16 = vpop.f32.mrb[7].mxu0  ;;  %v1849_v18 = vpop.f32.mrb[7].mxu1 }
 0x152   : > { %v726_v19 = vadd.f32 %v1799_v11, %v437_v7  ;;  %v742_v20 = vadd.f32 %v1847_v12, %v453_v9  ;;  %v1802_v21 = vadd.f32 %v1801_v16, %v1800_v13  ;;  %v1850_v22 = vadd.f32 %v1849_v18, %v1848_v14  ;;  %v444_v11 = vld [vmem:[#allocation2 + $0x48] sm:$0xff] }
 0x153   : > { %v460_v13 = vld [vmem:[#allocation2 + $0xc8] sm:$0xff] }
 0x154   : > { %758 = vst [vmem:[#allocation2 + $0x10] sm:$0xff] %v726_v19  ;;  %774 = vst [vmem:[#allocation2 + $0x90] sm:$0xff] %v742_v20  ;;  %v727_v23 = vadd.f32 %v1802_v21, %v438_v15  ;;  %v743_v24 = vadd.f32 %v1850_v22, %v454_v17 }
 0x156   : > { %759 = vst [vmem:[#allocation2 + $0x18] sm:$0xff] %v727_v23  ;;  %775 = vst [vmem:[#allocation2 + $0x98] sm:$0xff] %v743_v24  ;;  %v1803_v25 = vpop.f32.mrb[8].mxu0  ;;  %v1851_v26 = vpop.f32.mrb[8].mxu1  ;;  %v445_v23 = vld [vmem:[#allocation2 + $0x50] sm:$0xff] }
 0x157   : > { %v1804_v28 = vpop.f32.mrb[9].mxu0  ;;  %v1852_v30 = vpop.f32.mrb[9].mxu1 }
 0x158   : > { %v1805_v31 = vadd.f32 %v1804_v28, %v1803_v25  ;;  %v1853_v32 = vadd.f32 %v1852_v30, %v1851_v26  ;;  %v1806_v33 = vpop.f32.mrb[10].mxu0  ;;  %v1854_v34 = vpop.f32.mrb[10].mxu1  ;;  %v461_v25 = vld [vmem:[#allocation2 + $0xd0] sm:$0xff] }
 0x159   : > { %v1807_v36 = vpop.f32.mrb[11].mxu0  ;;  %v1855_v38 = vpop.f32.mrb[11].mxu1 }
 0x15a   : > { %v728_v39 = vadd.f32 %v1805_v31, %v439_v27  ;;  %v744_v40 = vadd.f32 %v1853_v32, %v455_v29  ;;  %v1808_v41 = vadd.f32 %v1807_v36, %v1806_v33  ;;  %v1856_v42 = vadd.f32 %v1855_v38, %v1854_v34  ;;  %v446_v31 = vld [vmem:[#allocation2 + $0x58] sm:$0xff] }
 0x15b   : > { %v462_v33 = vld [vmem:[#allocation2 + $0xd8] sm:$0xff] }
 0x15c   : > { %760 = vst [vmem:[#allocation2 + $0x20] sm:$0xff] %v728_v39  ;;  %776 = vst [vmem:[#allocation2 + $0xa0] sm:$0xff] %v744_v40  ;;  %v729_v43 = vadd.f32 %v1808_v41, %v440_v35  ;;  %v745_v44 = vadd.f32 %v1856_v42, %v456_v37 }
 0x15e   : > { %761 = vst [vmem:[#allocation2 + $0x28] sm:$0xff] %v729_v43  ;;  %777 = vst [vmem:[#allocation2 + $0xa8] sm:$0xff] %v745_v44  ;;  %v1809_v45 = vpop.f32.mrb[12].mxu0  ;;  %v1857_v46 = vpop.f32.mrb[12].mxu1  ;;  %v447_v43 = vld [vmem:[#allocation2 + $0x60] sm:$0xff] }
 0x15f   : > { %v1810_v48 = vpop.f32.mrb[13].mxu0  ;;  %v1858_v50 = vpop.f32.mrb[13].mxu1 }
 0x160   : > { %v1811_v51 = vadd.f32 %v1810_v48, %v1809_v45  ;;  %v1859_v52 = vadd.f32 %v1858_v50, %v1857_v46  ;;  %v1812_v53 = vpop.f32.mrb[14].mxu0  ;;  %v1860_v54 = vpop.f32.mrb[14].mxu1  ;;  %v463_v45 = vld [vmem:[#allocation2 + $0xe0] sm:$0xff] }
 0x161   : > { %v1813_v56 = vpop.f32.mrb[15].mxu0  ;;  %v1861_v58 = vpop.f32.mrb[15].mxu1 }
 0x162   : > { %v730_v59 = vadd.f32 %v1811_v51, %v441_v47  ;;  %v746_v60 = vadd.f32 %v1859_v52, %v457_v49  ;;  %v1814_v61 = vadd.f32 %v1813_v56, %v1812_v53  ;;  %v1862_v62 = vadd.f32 %v1861_v58, %v1860_v54  ;;  %v448_v51 = vld [vmem:[#allocation2 + $0x68] sm:$0xff] }
 0x163   : > { %v464_v53 = vld [vmem:[#allocation2 + $0xe8] sm:$0xff] }
 0x164   : > { %762 = vst [vmem:[#allocation2 + $0x30] sm:$0xff] %v730_v59  ;;  %778 = vst [vmem:[#allocation2 + $0xb0] sm:$0xff] %v746_v60  ;;  %v731_v63 = vadd.f32 %v1814_v61, %v442_v55  ;;  %v747_v0 = vadd.f32 %v1862_v62, %v458_v57 }
 0x166   : > { %763 = vst [vmem:[#allocation2 + $0x38] sm:$0xff] %v731_v63  ;;  %779 = vst [vmem:[#allocation2 + $0xb8] sm:$0xff] %v747_v0  ;;  %v1815_v1 = vpop.f32.mrb[16].mxu0  ;;  %v1863_v2 = vpop.f32.mrb[16].mxu1  ;;  %v449_v63 = vld [vmem:[#allocation2 + $0x70] sm:$0xff] }
 0x167   : > { %v1816_v4 = vpop.f32.mrb[17].mxu0  ;;  %v1864_v6 = vpop.f32.mrb[17].mxu1 }
 0x168   : > { %v1817_v7 = vadd.f32 %v1816_v4, %v1815_v1  ;;  %v1865_v8 = vadd.f32 %v1864_v6, %v1863_v2  ;;  %v1818_v9 = vpop.f32.mrb[18].mxu0  ;;  %v1866_v10 = vpop.f32.mrb[18].mxu1  ;;  %v465_v1 = vld [vmem:[#allocation2 + $0xf0] sm:$0xff] }
 0x169   : > { %v1819_v12 = vpop.f32.mrb[19].mxu0  ;;  %v1867_v14 = vpop.f32.mrb[19].mxu1 }
 0x16a   : > { %v732_v15 = vadd.f32 %v1817_v7, %v443_v3  ;;  %v748_v16 = vadd.f32 %v1865_v8, %v459_v5  ;;  %v1820_v17 = vadd.f32 %v1819_v12, %v1818_v9  ;;  %v1868_v18 = vadd.f32 %v1867_v14, %v1866_v10  ;;  %v450_v7 = vld [vmem:[#allocation2 + $0x78] sm:$0xff] }
 0x16b   : > { %v466_v9 = vld [vmem:[#allocation2 + $0xf8] sm:$0xff] }
 0x16c   : > { %764 = vst [vmem:[#allocation2 + $0x40] sm:$0xff] %v732_v15  ;;  %780 = vst [vmem:[#allocation2 + $0xc0] sm:$0xff] %v748_v16  ;;  %v733_v19 = vadd.f32 %v1820_v17, %v444_v11  ;;  %v749_v20 = vadd.f32 %v1868_v18, %v460_v13  ;;  %v2480_v17 = vld [vmem:[%s2872_s4] sm:$0x1] (!%p1770_p7)  ;;  %v793_v18 = vld [vmem:[#allocation2 + $0x8] sm:$0xff] (!%p1770_p7) }
 0x16d   : > { %900 = vrot.lane.b32.xlu0 (!%p1770_p7), %v2480_v17, %s2229_s6 }
 0x16e   : > { %765 = vst [vmem:[#allocation2 + $0x48] sm:$0xff] %v733_v19  ;;  %781 = vst [vmem:[#allocation2 + $0xc8] sm:$0xff] %v749_v20  ;;  %v1821_v21 = vpop.f32.mrb[20].mxu0  ;;  %v1869_v22 = vpop.f32.mrb[20].mxu1  ;;  %v2485_v19 = vld [vmem:[%s2870_s2] ss:$0 sm:$0xff] (!%p1770_p7)  ;;  %v904_v20 = vlaneseq (!%p1770_p7) }
 0x16f   : > { %v1822_v24 = vpop.f32.mrb[21].mxu0  ;;  %v1870_v26 = vpop.f32.mrb[21].mxu1 }
 0x170   : > { %v1823_v27 = vadd.f32 %v1822_v24, %v1821_v21  ;;  %v1871_v28 = vadd.f32 %v1870_v26, %v1869_v22  ;;  %v1824_v29 = vpop.f32.mrb[22].mxu0  ;;  %v1872_v30 = vpop.f32.mrb[22].mxu1  ;;  %v832_v21 = vadd.f32 (!%p1770_p7), %v2485_v19, %v793_v18  ;;  %v895_v22 = vld [vmem:[%s2881_s11 + $0x1] sm:$0x1] (!%p1770_p7)  ;;  %v794_v24 = vld [vmem:[#allocation2 + $0x10] sm:$0xff] (!%p1770_p7)  ;;  %v2496_v26 = vshrl.u32 (!%p1770_p7), %v904_v20, 7 }
 0x171   : > { %v1825_v32 = vpop.f32.mrb[23].mxu0  ;;  %v1873_v34 = vpop.f32.mrb[23].mxu1 }
 0x172   : > { %v734_v35 = vadd.f32 %v1823_v27, %v445_v23  ;;  %v750_v36 = vadd.f32 %v1871_v28, %v461_v25  ;;  %v1826_v37 = vadd.f32 %v1825_v32, %v1824_v29  ;;  %v1874_v38 = vadd.f32 %v1873_v34, %v1872_v30  ;;  %v896_v23 = vld [vmem:[%s2881_s11] sm:$0x1] (!%p1770_p7)  ;;  %v795_v28 = vld [vmem:[#allocation2 + $0x18] sm:$0xff] (!%p1770_p7) }
 0x173   : > { %v897_v25 = vsub.f32 (!%p1770_p7), %v895_v22, %v896_v23  ;;  %v833_v27 = vadd.f32 (!%p1770_p7), %v2485_v19, %v794_v24  ;;  %v864_v29 = vmax.f32 (!%p1770_p7), %v832_v21, 0.0  ;;  %v906_v30 = vsub.s32 (!%p1770_p7), 0, %v2496_v26  ;;  %v796_v34 = vld [vmem:[#allocation2 + $0x20] sm:$0xff] (!%p1770_p7) }
 0x174   : > { %766 = vst [vmem:[#allocation2 + $0x50] sm:$0xff] %v734_v35  ;;  %782 = vst [vmem:[#allocation2 + $0xd0] sm:$0xff] %v750_v36  ;;  %v735_v39 = vadd.f32 %v1826_v37, %v446_v31  ;;  %v751_v40 = vadd.f32 %v1874_v38, %v462_v33  ;;  %v834_v33 = vadd.f32 (!%p1770_p7), %v2485_v19, %v795_v28 }
 0x175   : > { %v2502_v31 = vrot.slane (!%p1770_p7), %v897_v25, %v906_v30  ;;  %v865_v32 = vmax.f32 (!%p1770_p7), %v833_v27, 0.0  ;;  %v835_v38 = vadd.f32 (!%p1770_p7), %v2485_v19, %v796_v34 }
 0x176   : > { %767 = vst [vmem:[#allocation2 + $0x58] sm:$0xff] %v735_v39  ;;  %783 = vst [vmem:[#allocation2 + $0xd8] sm:$0xff] %v751_v40  ;;  %v1827_v41 = vpop.f32.mrb[24].mxu0  ;;  %v1875_v42 = vpop.f32.mrb[24].mxu1  ;;  %v866_v37 = vmax.f32 (!%p1770_p7), %v834_v33, 0.0  ;;  %v797_v39 = vld [vmem:[#allocation2 + $0x28] sm:$0xff] (!%p1770_p7) }
 0x177   : > { %v1828_v44 = vpop.f32.mrb[25].mxu0  ;;  %v1876_v46 = vpop.f32.mrb[25].mxu1  ;;  %v909_v35 = vmul.f32 (!%p1770_p7), %v2502_v31, %v864_v29  ;;  %v910_v36 = vmul.f32 (!%p1770_p7), %v2502_v31, %v865_v32 }
 0x178   : > { %v1829_v47 = vadd.f32 %v1828_v44, %v1827_v41  ;;  %v1877_v48 = vadd.f32 %v1876_v46, %v1875_v42  ;;  %v1830_v49 = vpop.f32.mrb[26].mxu0  ;;  %v1878_v50 = vpop.f32.mrb[26].mxu1  ;;  %v911_v40 = vmul.f32 (!%p1770_p7), %v2502_v31, %v866_v37  ;;  %v867_v41 = vmax.f32 (!%p1770_p7), %v835_v38, 0.0  ;;  %v792_v44 = vld [vmem:[#allocation2] sm:$0xff] (!%p1770_p7) }
 0x179   : > { %v1831_v52 = vpop.f32.mrb[27].mxu0  ;;  %v1879_v54 = vpop.f32.mrb[27].mxu1  ;;  %942 = vadd.xlane.f32.xlu1 (!%p1770_p7), %v909_v35  ;;  %v836_v42 = vadd.f32 (!%p1770_p7), %v2485_v19, %v797_v39  ;;  %v808_v35 = vld [vmem:[#allocation2 + $0x80] sm:$0xff] (!%p1770_p7) }
 0x17a   : > { %v736_v55 = vadd.f32 %v1829_v47, %v447_v43  ;;  %v752_v56 = vadd.f32 %v1877_v48, %v463_v45  ;;  %v1832_v57 = vadd.f32 %v1831_v52, %v1830_v49  ;;  %v1880_v58 = vadd.f32 %v1879_v54, %v1878_v50  ;;  %v798_v43 = vld [vmem:[#allocation2 + $0x30] sm:$0xff] (!%p1770_p7)  ;;  %v817_v45 = vld [vmem:[#allocation2 + $0xc8] sm:$0xff] (!%p1770_p7)  ;;  %v799_v49 = vld [vmem:[#allocation2 + $0x38] sm:$0xff] (!%p1770_p7) }
 0x17b   : > { %v912_v46 = vmul.f32 (!%p1770_p7), %v2502_v31, %v867_v41  ;;  %v868_v47 = vmax.f32 (!%p1770_p7), %v836_v42, 0.0  ;;  %v837_v48 = vadd.f32 (!%p1770_p7), %v2485_v19, %v798_v43  ;;  %v856_v52 = vadd.f32 (!%p1770_p7), %v2485_v19, %v817_v45  ;;  %v810_v43 = vld [vmem:[#allocation2 + $0x90] sm:$0xff] (!%p1770_p7) }
 0x17c   : > { %768 = vst [vmem:[#allocation2 + $0x60] sm:$0xff] %v736_v55  ;;  %784 = vst [vmem:[#allocation2 + $0xe0] sm:$0xff] %v752_v56  ;;  %v737_v59 = vadd.f32 %v1832_v57, %v448_v51  ;;  %v753_v60 = vadd.f32 %v1880_v58, %v464_v53  ;;  %v831_v51 = vadd.f32 (!%p1770_p7), %v2485_v19, %v792_v44  ;;  %v802_v56 = vld [vmem:[#allocation2 + $0x50] sm:$0xff] (!%p1770_p7) }
 0x17d   : > { %944 = vadd.xlane.f32.xlu1 (!%p1770_p7), %v910_v36  ;;  %v819_v53 = vld [vmem:[#allocation2 + $0xd8] sm:$0xff] (!%p1770_p7)  ;;  %v913_v57 = vmul.f32 (!%p1770_p7), %v2502_v31, %v868_v47  ;;  %v869_v58 = vmax.f32 (!%p1770_p7), %v837_v48, 0.0  ;;  %v847_v42 = vadd.f32 (!%p1770_p7), %v2485_v19, %v808_v35 }
 0x17e   : > { %769 = vst [vmem:[#allocation2 + $0x68] sm:$0xff] %v737_v59  ;;  %785 = vst [vmem:[#allocation2 + $0xe8] sm:$0xff] %v753_v60  ;;  %v1833_v61 = vpop.f32.mrb[28].mxu0  ;;  %v1881_v62 = vpop.f32.mrb[28].mxu1  ;;  %v838_v59 = vadd.f32 (!%p1770_p7), %v2485_v19, %v799_v49  ;;  %v888_v60 = vmax.f32 (!%p1770_p7), %v856_v52, 0.0  ;;  %v803_v29 = vld [vmem:[#allocation2 + $0x58] sm:$0xff] (!%p1770_p7) }
 0x17f   : > { %v1834_v0 = vpop.f32.mrb[29].mxu0  ;;  %v1882_v2 = vpop.f32.mrb[29].mxu1  ;;  %v842_v38 = vadd.f32 (!%p1770_p7), %v2485_v19, %v803_v29  ;;  %v879_v49 = vmax.f32 (!%p1770_p7), %v847_v42, 0.0 }
 0x180   : > { %v1835_v3 = vadd.f32 %v1834_v0, %v1833_v61  ;;  %v1883_v4 = vadd.f32 %v1882_v2, %v1881_v62  ;;  %v1836_v5 = vpop.f32.mrb[30].mxu0  ;;  %v1884_v6 = vpop.f32.mrb[30].mxu1  ;;  %791 = sbr.rel (%p1770_p7) target bundleno = 837 (0x345), region = 52  ;;  %v800_v61 = vld [vmem:[#allocation2 + $0x40] sm:$0xff] (!%p1770_p7)  ;;  %v863_v2 = vmax.f32 (!%p1770_p7), %v831_v51, 0.0 }
 0x181   : > { %v1837_v8 = vpop.f32.mrb[31].mxu0  ;;  %v1885_v10 = vpop.f32.mrb[31].mxu1  ;;  %946 = vadd.xlane.f32.xlu1 (!%p1770_p7), %v911_v40  ;;  %v874_v45 = vmax.f32 (!%p1770_p7), %v842_v38, 0.0  ;;  %v812_v51 = vld [vmem:[#allocation2 + $0xa0] sm:$0xff] (!%p1770_p7) }
 0x182   : > { %v738_v11 = vadd.f32 %v1835_v3, %v449_v63  ;;  %v754_v12 = vadd.f32 %v1883_v4, %v465_v1  ;;  %v1838_v13 = vadd.f32 %v1837_v8, %v1836_v5  ;;  %v1886_v14 = vadd.f32 %v1885_v10, %v1884_v6 }
 0x183   : > { %v858_v63 = vadd.f32 (!%p1770_p7), %v2485_v19, %v819_v53  ;;  %v841_v3 = vadd.f32 (!%p1770_p7), %v2485_v19, %v802_v56  ;;  %v2522_v4 = vmul.f32 (!%p1770_p7), %v2502_v31, %v888_v60  ;;  %v804_v5 = vld [vmem:[#allocation2 + $0x60] sm:$0xff] (!%p1770_p7)  ;;  %v914_v10 = vmul.f32 (!%p1770_p7), %v2502_v31, %v869_v58 }
 0x184   : > { %770 = vst [vmem:[#allocation2 + $0x70] sm:$0xff] %v738_v11  ;;  %786 = vst [vmem:[#allocation2 + $0xf0] sm:$0xff] %v754_v12  ;;  %v739_v15 = vadd.f32 %v1838_v13, %v450_v7  ;;  %v755_v16 = vadd.f32 %v1886_v14, %v466_v9  ;;  %v870_v11 = vmax.f32 (!%p1770_p7), %v838_v59, 0.0  ;;  %v839_v12 = vadd.f32 (!%p1770_p7), %v2485_v19, %v800_v61  ;;  %v801_v13 = vld [vmem:[#allocation2 + $0x48] sm:$0xff] (!%p1770_p7)  ;;  %v814_v59 = vld [vmem:[#allocation2 + $0xb0] sm:$0xff] (!%p1770_p7) }
 0x185   : > { %v821_v54 = vld [vmem:[#allocation2 + $0xe8] sm:$0xff] (!%p1770_p7)  ;;  %948 = vadd.xlane.f32.xlu1 (!%p1770_p7), %v912_v46  ;;  %v890_v7 = vmax.f32 (!%p1770_p7), %v858_v63, 0.0  ;;  %v908_v21 = vmul.f32 (!%p1770_p7), %v2502_v31, %v863_v2  ;;  %v873_v22 = vmax.f32 (!%p1770_p7), %v841_v3, 0.0  ;;  %v843_v23 = vadd.f32 (!%p1770_p7), %v2485_v19, %v804_v5  ;;  %v811_v63 = vld [vmem:[#allocation2 + $0x98] sm:$0xff] (!%p1770_p7)  ;;  %v816_v3 = vld [vmem:[#allocation2 + $0xc0] sm:$0xff] (!%p1770_p7) }
 0x186   : > { %771 = vst [vmem:[#allocation2 + $0x78] sm:$0xff] %v739_v15  ;;  %787 = vst [vmem:[#allocation2 + $0xf8] sm:$0xff] %v755_v16  ;;  %v860_v0 = vadd.f32 (!%p1770_p7), %v2485_v19, %v821_v54  ;;  %v915_v25 = vmul.f32 (!%p1770_p7), %v2502_v31, %v870_v11  ;;  %v871_v27 = vmax.f32 (!%p1770_p7), %v839_v12, 0.0  ;;  %v840_v28 = vadd.f32 (!%p1770_p7), %v2485_v19, %v801_v13  ;;  %v805_v39 = vld [vmem:[#allocation2 + $0x68] sm:$0xff] (!%p1770_p7)  ;;  %v818_v12 = vld [vmem:[#allocation2 + $0xd0] sm:$0xff] (!%p1770_p7) }
 0x187   : > { %v2530_v15 = vmul.f32 %v2502_v31, %v890_v7  ;;  %v918_v32 = vmul.f32 %v2502_v31, %v873_v22  ;;  %v875_v33 = vmax.f32 %v843_v23, 0.0  ;;  %v844_v46 = vadd.f32 %v2485_v19, %v805_v39  ;;  %v820_v29 = vld [vmem:[#allocation2 + $0xe0] sm:$0xff] }
 0x188   : > { %v892_v8 = vmax.f32 %v860_v0, 0.0  ;;  %v916_v36 = vmul.f32 %v2502_v31, %v871_v27  ;;  %v872_v37 = vmax.f32 %v840_v28, 0.0  ;;  %v919_v52 = vmul.f32 %v2502_v31, %v874_v45 }
 0x189   : > { %950 = vadd.xlane.f32.xlu1 %v913_v57  ;;  %v920_v40 = vmul.f32 %v2502_v31, %v875_v33  ;;  %v876_v53 = vmax.f32 %v844_v46, 0.0  ;;  %v924_v56 = vmul.f32 %v2502_v31, %v879_v49  ;;  %v851_v58 = vadd.f32 %v2485_v19, %v812_v51 }
 0x18a   : > { %v2533_v16 = vmul.f32 %v2502_v31, %v892_v8  ;;  %v917_v44 = vmul.f32 %v2502_v31, %v872_v37  ;;  %v853_v2 = vadd.f32 %v2485_v19, %v814_v59  ;;  %v850_v7 = vadd.f32 %v2485_v19, %v811_v63  ;;  %v813_v8 = vld [vmem:[#allocation2 + $0xa8] sm:$0xff] }
 0x18b   : > { %v822_v50 = vld [vmem:[#allocation2 + $0xf0] sm:$0xff]  ;;  %v921_v60 = vmul.f32 %v2502_v31, %v876_v53  ;;  %v855_v11 = vadd.f32 %v2485_v19, %v816_v3  ;;  %v2230_v13 = vmov 1   ;;  %v852_v23 = vadd.f32 %v2485_v19, %v813_v8 }
 0x18c   : > { %v861_v62 = vadd.f32 %v2485_v19, %v822_v50  ;;  %v806_v24 = vld [vmem:[#allocation2 + $0x70] sm:$0xff]  ;;  %940 = vadd.xlane.f32.xlu0 %v908_v21  ;;  %v849_v50 = vadd.f32 %v2485_v19, %v810_v43  ;;  %1996 = vset.pattern.permute.xlu1 %v2230_v13  ;;  %v882_v22 = vmax.f32 %v850_v7, 0.0  ;;  %v857_v28 = vadd.f32 %v2485_v19, %v818_v12 }
 0x18d   : > { %v823_v55 = vld [vmem:[#allocation2 + $0xf8] sm:$0xff]  ;;  %952 = vadd.xlane.f32.xlu1 %v914_v10  ;;  %v845_v34 = vadd.f32 %v2485_v19, %v806_v24  ;;  %v885_v10 = vmax.f32 %v853_v2, 0.0  ;;  %1997 = vset.pattern.permute.xlu0 %v2230_v13  ;;  %v887_v27 = vmax.f32 %v855_v11, 0.0  ;;  %v884_v33 = vmax.f32 %v852_v23, 0.0 }
 0x18e   : > { %v862_v1 = vadd.f32 %v2485_v19, %v823_v55  ;;  %v893_v6 = vmax.f32 %v861_v62, 0.0  ;;  %v807_v47 = vld [vmem:[#allocation2 + $0x78] sm:$0xff]  ;;  %v809_v55 = vld [vmem:[#allocation2 + $0x88] sm:$0xff]  ;;  %v881_v57 = vmax.f32 %v849_v50, 0.0  ;;  %v859_v37 = vadd.f32 %v2485_v19, %v820_v29 }
 0x18f   : > { %v877_v41 = vmax.f32 %v845_v34, 0.0  ;;  %v846_v54 = vadd.f32 %v2485_v19, %v807_v47  ;;  %v848_v62 = vadd.f32 %v2485_v19, %v809_v55  ;;  %v815_v24 = vld [vmem:[#allocation2 + $0xb8] sm:$0xff]  ;;  %v932_v35 = vmul.f32 %v2502_v31, %v887_v27 }
 0x190   : > { %v894_v9 = vmax.f32 %v862_v1, 0.0  ;;  %v2527_v14 = vmul.f32 %v2502_v31, %v893_v6  ;;  %960 = vadd.xlane.f32.xlu0 %v918_v32  ;;  %v926_v0 = vmul.f32 %v2502_v31, %v881_v57  ;;  %v883_v1 = vmax.f32 %v851_v58, 0.0 }
 0x191   : > { %954 = vadd.xlane.f32.xlu1 %v915_v25  ;;  %v922_v48 = vmul.f32 %v2502_v31, %v877_v41  ;;  %v878_v61 = vmax.f32 %v846_v54, 0.0  ;;  %v880_v6 = vmax.f32 %v848_v62, 0.0  ;;  %v930_v25 = vmul.f32 %v2502_v31, %v885_v10 }
 0x192   : > { %v2536_v18 = vmul.f32 %v2502_v31, %v894_v9  ;;  %v928_v9 = vmul.f32 %v2502_v31, %v883_v1  ;;  %v927_v32 = vmul.f32 %v2502_v31, %v882_v22  ;;  %v854_v34 = vadd.f32 %v2485_v19, %v815_v24 }
 0x193   : > { %v923_v5 = vmul.f32 %v2502_v31, %v878_v61  ;;  %v925_v21 = vmul.f32 %v2502_v31, %v880_v6  ;;  %v929_v38 = vmul.f32 %v2502_v31, %v884_v33  ;;  %v891_v41 = vmax.f32 %v859_v37, 0.0 }
 0x194   : > { %964 = vadd.xlane.f32.xlu0 %v920_v40  ;;  %v886_v39 = vmax.f32 %v854_v34, 0.0 }
 0x195   : > { %956 = vadd.xlane.f32.xlu1 %v916_v36  ;;  %v889_v36 = vmax.f32 %v857_v28, 0.0  ;;  %v936_v43 = vmul.f32 %v2502_v31, %v891_v41 }
 0x196   : > { %v931_v42 = vmul.f32 %v2502_v31, %v886_v39 }
 0x197   : > { %v934_v40 = vmul.f32 %v2502_v31, %v889_v36 }
 0x198   : > { %968 = vadd.xlane.f32.xlu0 %v922_v48 }
 0x199   : > { %958 = vadd.xlane.f32.xlu1 %v917_v44 }
 0x19c   : > { %972 = vadd.xlane.f32.xlu0 %v924_v56 }
 0x19d   : > { %962 = vadd.xlane.f32.xlu1 %v919_v52 }
 0x1a0   : > { %976 = vadd.xlane.f32.xlu0 %v926_v0 }
 0x1a1   : > { %966 = vadd.xlane.f32.xlu1 %v921_v60 }
 0x1a4   : > { %980 = vadd.xlane.f32.xlu0 %v928_v9 }
 0x1a5   : > { %970 = vadd.xlane.f32.xlu1 %v923_v5 }
 0x1a8   : > { %984 = vadd.xlane.f32.xlu0 %v930_v25 }
 0x1a9   : > { %974 = vadd.xlane.f32.xlu1 %v925_v21 }
 0x1ac   : > { %988 = vadd.xlane.f32.xlu0 %v932_v35 }
 0x1ad   : > { %978 = vadd.xlane.f32.xlu1 %v927_v32 }
 0x1b0   : > { %992 = vadd.xlane.f32.xlu0 %v934_v40 }
 0x1b1   : > { %982 = vadd.xlane.f32.xlu1 %v929_v38 }
 0x1b4   : > { %996 = vadd.xlane.f32.xlu0 %v936_v43 }
 0x1b5   : > { %986 = vadd.xlane.f32.xlu1 %v931_v42 }
 0x1b8   : > { %1000 = vadd.xlane.f32.xlu0 %v2527_v14 }
 0x1b9   : > { %990 = vadd.xlane.f32.xlu1 %v2522_v4 }
 0x1bd   : > { %994 = vadd.xlane.f32.xlu1 %v2530_v15 }
 0x1c1   : > { %998 = vadd.xlane.f32.xlu1 %v2533_v16 }
 0x1c5   : > { %1002 = vadd.xlane.f32.xlu1 %v2536_v18 }
 0x1df   : > { %v901_v19 = vpop.permute.xlu0 %900 }
 0x1e0   : > { %v903_v44 = vsub.f32 %v2480_v17, %v901_v19 }
 0x1e2   : > { %v2584_v45 = vrot.slane %v903_v44, %v906_v30 }
 0x206   : > { %v943_v31 = vpop.xlane.xlu1 %942 }
 0x207   : > { %v1011_v46 = vadd.f32 %v2584_v45, %v943_v31 }
 0x209   : > { %v1043_v47 = vsub.f32 0.0, %v1011_v46 }
 0x20a   : > { %v945_v4 = vpop.xlane.xlu1 %944 }
 0x20b   : > { %v1076_v48 = vmul.f32 1.442695, %v1043_v47  ;;  %v1012_v50 = vadd.f32 %v2584_v45, %v945_v4 }
 0x20d   : > { %1998 = vpow2.f32 %v1076_v48  ;;  %v1044_v52 = vsub.f32 0.0, %v1012_v50 }
 0x20e   : > { %v947_v14 = vpop.xlane.xlu1 %946 }
 0x20f   : > { %v1013_v15 = vadd.f32 %v2584_v45, %v947_v14  ;;  %v1078_v58 = vmul.f32 1.442695, %v1044_v52 }
 0x211   : > { %v1045_v16 = vsub.f32 0.0, %v1013_v15 }
 0x212   : > { %v949_v49 = vpop.xlane.xlu1 %948 }
 0x213   : > { %v1080_v18 = vmul.f32 1.442695, %v1045_v16  ;;  %v1014_v55 = vadd.f32 %v2584_v45, %v949_v49 }
 0x215   : > { %2000 = vpow2.f32 %v1080_v18  ;;  %v1046_v62 = vsub.f32 0.0, %v1014_v55 }
 0x216   : > { %v951_v17 = vpop.xlane.xlu1 %950 }
 0x217   : > { %v1999_v26 = vpop.eup %1998  ;;  %v1015_v30 = vadd.f32 %v2584_v45, %v951_v17  ;;  %v1082_v7 = vmul.f32 1.442695, %v1046_v62 }
 0x218   : > { %v1139_v51 = vadd.f32 1.0, %v1999_v26 }
 0x219   : > { %v1047_v53 = vsub.f32 0.0, %v1015_v30  ;;  %v941_v57 = vpop.xlane.xlu0 %940 }
 0x21a   : > { %2002 = vrcp.f32 %v1139_v51  ;;  %v953_v54 = vpop.xlane.xlu1 %952  ;;  %v1010_v59 = vadd.f32 %v2584_v45, %v941_v57 }
 0x21b   : > { %v1084_v56 = vmul.f32 1.442695, %v1047_v53  ;;  %v1016_v63 = vadd.f32 %v2584_v45, %v953_v54 }
 0x21c   : > { %v1042_v0 = vsub.f32 0.0, %v1010_v59 }
 0x21d   : > { %2004 = vpow2.f32 %v1084_v56  ;;  %v1048_v8 = vsub.f32 0.0, %v1016_v63  ;;  %v961_v23 = vpop.xlane.xlu0 %960 }
 0x21e   : > { %v955_v60 = vpop.xlane.xlu1 %954  ;;  %2006 = vpow2.f32 %v1078_v58  ;;  %v1074_v3 = vmul.f32 1.442695, %v1042_v0  ;;  %v1020_v62 = vadd.f32 %v2584_v45, %v961_v23 }
 0x21f   : > { %v2001_v61 = vpop.eup %2000  ;;  %v1017_v1 = vadd.f32 %v2584_v45, %v955_v60  ;;  %v1086_v13 = vmul.f32 1.442695, %v1048_v8 }
 0x220   : > { %v1141_v2 = vadd.f32 1.0, %v2001_v61 }
 0x221   : > { %v1049_v5 = vsub.f32 0.0, %v1017_v1  ;;  %v2604_v36 = vpop.xlane.xlu0 %964 }
 0x222   : > { %2008 = vrcp.f32 %v1141_v2  ;;  %v2594_v6 = vpop.xlane.xlu1 %956 }
 0x223   : > { %2010 = vpow2.f32 %v1074_v3  ;;  %v1088_v9 = vmul.f32 1.442695, %v1049_v5  ;;  %v1018_v55 = vadd.f32 %v2584_v45, %v2594_v6 }
 0x224   : > { %v2596_v10 = vpop.eup %2002 }
 0x225   : > { %2012 = vpow2.f32 %v1088_v9  ;;  %1436 = vperm.xlu0 %1997, %v2596_v10   ;;  %v969_v48 = vpop.xlane.xlu0 %968  ;;  %v1050_v1 = vsub.f32 0.0, %v1018_v55 }
 0x226   : > { %v959_v11 = vpop.xlane.xlu1 %958  ;;  %2014 = vpow2.f32 %v1082_v7 }
 0x227   : > { %v2005_v12 = vpop.eup %2004  ;;  %v1019_v21 = vadd.f32 %v2584_v45, %v959_v11  ;;  %v1052_v11 = vsub.f32 0.0, %v1020_v62 }
 0x228   : > { %v1143_v22 = vadd.f32 1.0, %v2005_v12  ;;  %v2007_v27 = vpop.eup %2006 }
 0x229   : > { %v1051_v24 = vsub.f32 0.0, %v1019_v21  ;;  %v1140_v41 = vadd.f32 1.0, %v2007_v27  ;;  %v973_v52 = vpop.xlane.xlu0 %972  ;;  %v1090_v21 = vmul.f32 1.442695, %v1050_v1  ;;  %v1024_v27 = vadd.f32 %v2584_v45, %v969_v48 }
 0x22a   : > { %2016 = vrcp.f32 %v1143_v22  ;;  %v963_v25 = vpop.xlane.xlu1 %962  ;;  %v1022_v22 = vadd.f32 %v2584_v45, %v2604_v36 }
 0x22b   : > { %2018 = vpow2.f32 %v1086_v13  ;;  %v1092_v28 = vmul.f32 1.442695, %v1051_v24  ;;  %v1021_v29 = vadd.f32 %v2584_v45, %v963_v25 }
 0x22c   : > { %v2601_v32 = vpop.eup %2008 }
 0x22d   : > { %v2011_v33 = vpop.eup %2010  ;;  %2020 = vpow2.f32 %v1092_v28  ;;  %v1053_v34 = vsub.f32 0.0, %v1021_v29  ;;  %1446 = vperm.xlu0 %1997, %v2601_v32   ;;  %v977_v7 = vpop.xlane.xlu0 %976 }
 0x22e   : > { %v1138_v35 = vadd.f32 1.0, %v2011_v33  ;;  %v967_v37 = vpop.xlane.xlu1 %966  ;;  %v1028_v55 = vadd.f32 %v2584_v45, %v977_v7 }
 0x22f   : > { %v2013_v38 = vpop.eup %2012  ;;  %v1096_v39 = vmul.f32 1.442695, %v1053_v34  ;;  %v1023_v40 = vadd.f32 %v2584_v45, %v967_v37  ;;  %v1094_v34 = vmul.f32 1.442695, %v1052_v11 }
 0x230   : > { %2022 = vrcp.f32 %v1138_v35  ;;  %v1145_v42 = vadd.f32 1.0, %v2013_v38  ;;  %v2015_v43 = vpop.eup %2014 }
 0x231   : > { %2024 = vpow2.f32 %v1096_v39  ;;  %v1055_v19 = vsub.f32 0.0, %v1023_v40  ;;  %v1142_v4 = vadd.f32 1.0, %v2015_v43  ;;  %v981_v35 = vpop.xlane.xlu0 %980  ;;  %v1054_v39 = vsub.f32 0.0, %v1022_v22 }
 0x232   : > { %2026 = vrcp.f32 %v1145_v42  ;;  %v971_v44 = vpop.xlane.xlu1 %970  ;;  %v1056_v43 = vsub.f32 0.0, %v1024_v27  ;;  %v1030_v7 = vadd.f32 %v2584_v45, %v981_v35 }
 0x233   : > { %v1100_v31 = vmul.f32 1.442695, %v1055_v19  ;;  %v1025_v46 = vadd.f32 %v2584_v45, %v971_v44  ;;  %2028 = vrcp.f32 %v1140_v41  ;;  %v1026_v19 = vadd.f32 %v2584_v45, %v973_v52 }
 0x234   : > { %v2608_v47 = vpop.eup %2016 }
 0x235   : > { %v2019_v14 = vpop.eup %2018  ;;  %2030 = vpow2.f32 %v1100_v31  ;;  %v1057_v15 = vsub.f32 0.0, %v1025_v46  ;;  %1456 = vperm.xlu0 %1997, %v2608_v47   ;;  %v1235_v46 = vsub.f32 1.0, %v2596_v10 }
 0x236   : > { %v975_v16 = vpop.xlane.xlu1 %974  ;;  %2032 = vrcp.f32 %v1142_v4  ;;  %v1144_v17 = vadd.f32 1.0, %v2019_v14 }
 0x237   : > { %v2021_v49 = vpop.eup %2020  ;;  %v1104_v18 = vmul.f32 1.442695, %v1057_v15  ;;  %v1027_v50 = vadd.f32 %v2584_v45, %v975_v16  ;;  %v1098_v15 = vmul.f32 1.442695, %v1054_v39 }
 0x238   : > { %v1147_v26 = vadd.f32 1.0, %v2021_v49 }
 0x239   : > { %2034 = vpow2.f32 %v1104_v18  ;;  %v1059_v30 = vsub.f32 0.0, %v1027_v50  ;;  %v1102_v50 = vmul.f32 1.442695, %v1056_v43 }
 0x23a   : > { %v2023_v51 = vpop.eup %2022  ;;  %2036 = vrcp.f32 %v1147_v26  ;;  %v979_v53 = vpop.xlane.xlu1 %978 }
 0x23b   : > { %v2025_v54 = vpop.eup %2024  ;;  %v1108_v56 = vmul.f32 1.442695, %v1059_v30  ;;  %v1029_v57 = vadd.f32 %v2584_v45, %v979_v53  ;;  %1431 = vperm.xlu1 %1996, %v2023_v51   ;;  %2038 = vrcp.f32 %v1144_v17  ;;  %v1234_v5 = vsub.f32 1.0, %v2023_v51  ;;  %v985_v26 = vpop.xlane.xlu0 %984 }
 0x23c   : > { %v2615_v58 = vpop.eup %2026  ;;  %v1149_v59 = vadd.f32 1.0, %v2025_v54  ;;  %v1058_v17 = vsub.f32 0.0, %v1026_v19 }
 0x23d   : > { %2040 = vpow2.f32 %v1108_v56  ;;  %v1061_v60 = vsub.f32 0.0, %v1029_v57  ;;  %1466 = vperm.xlu0 %1997, %v2615_v58   ;;  %v2618_v61 = vpop.eup %2028 }
 0x23e   : > { %2042 = vrcp.f32 %v1149_v59  ;;  %v983_v63 = vpop.xlane.xlu1 %982  ;;  %v1236_v51 = vsub.f32 1.0, %v2618_v61 }
 0x23f   : > { %v2031_v0 = vpop.eup %2030  ;;  %v1112_v2 = vmul.f32 1.442695, %v1061_v60  ;;  %v1031_v3 = vadd.f32 %v2584_v45, %v983_v63  ;;  %1441 = vperm.xlu1 %1996, %v2618_v61   ;;  %v1106_v60 = vmul.f32 1.442695, %v1058_v17 }
 0x240   : > { %v1151_v6 = vadd.f32 1.0, %v2031_v0  ;;  %v2623_v9 = vpop.eup %2032  ;;  %v1237_v0 = vsub.f32 1.0, %v2601_v32 }
 0x241   : > { %2044 = vpow2.f32 %v1112_v2  ;;  %v1063_v8 = vsub.f32 0.0, %v1031_v3  ;;  %1271 = vperm.xlu0 %1997, %v1234_v5   ;;  %v989_v2 = vpop.xlane.xlu0 %988 }
 0x242   : > { %2046 = vrcp.f32 %v1151_v6  ;;  %v987_v12 = vpop.xlane.xlu1 %986  ;;  %v1060_v6 = vsub.f32 0.0, %v1028_v55 }
 0x243   : > { %v2035_v13 = vpop.eup %2034  ;;  %v1116_v23 = vmul.f32 1.442695, %v1063_v8  ;;  %v1033_v24 = vadd.f32 %v2584_v45, %v987_v12  ;;  %1451 = vperm.xlu1 %1996, %v2623_v9  }
 0x244   : > { %v2629_v25 = vpop.eup %2036  ;;  %v1153_v28 = vadd.f32 1.0, %v2035_v13 }
 0x245   : > { %2048 = vpow2.f32 %v1116_v23  ;;  %v1065_v29 = vsub.f32 0.0, %v1033_v24  ;;  %v2632_v33 = vpop.eup %2038  ;;  %v1243_v36 = vsub.f32 1.0, %v2629_v25  ;;  %v1238_v23 = vsub.f32 1.0, %v2623_v9 }
 0x246   : > { %2050 = vrcp.f32 %v1153_v28  ;;  %v991_v37 = vpop.xlane.xlu1 %990  ;;  %v1110_v28 = vmul.f32 1.442695, %v1060_v6  ;;  %v1239_v9 = vsub.f32 1.0, %v2608_v47 }
 0x247   : > { %v2041_v38 = vpop.eup %2040  ;;  %2052 = vpow2.f32 %v1090_v21  ;;  %v1120_v40 = vmul.f32 1.442695, %v1065_v29  ;;  %v1035_v41 = vadd.f32 %v2584_v45, %v991_v37  ;;  %1461 = vperm.xlu1 %1996, %v2632_v33   ;;  %1316 = vperm.xlu0 %1997, %v1243_v36   ;;  %v1062_v29 = vsub.f32 0.0, %v1030_v7 }
 0x248   : > { %v2637_v42 = vpop.eup %2042  ;;  %v1155_v44 = vadd.f32 1.0, %v2041_v38  ;;  %v993_v38 = vpop.xlane.xlu0 %992 }
 0x249   : > { %2054 = vpow2.f32 %v1120_v40  ;;  %v1067_v31 = vsub.f32 0.0, %v1035_v41  ;;  %v1245_v48 = vsub.f32 1.0, %v2637_v42 }
 0x24a   : > { %2056 = vrcp.f32 %v1155_v44  ;;  %v995_v4 = vpop.xlane.xlu1 %994  ;;  %v1114_v44 = vmul.f32 1.442695, %v1062_v29 }
 0x24b   : > { %v2045_v14 = vpop.eup %2044  ;;  %2058 = vpow2.f32 %v1094_v34  ;;  %v1124_v16 = vmul.f32 1.442695, %v1067_v31  ;;  %v1037_v49 = vadd.f32 %v2584_v45, %v995_v4  ;;  %1276 = vperm.xlu1 %1996, %v1235_v46   ;;  %1326 = vperm.xlu0 %1997, %v1245_v48   ;;  %v1032_v34 = vadd.f32 %v2584_v45, %v985_v26 }
 0x24c   : > { %v2643_v18 = vpop.eup %2046  ;;  %v1157_v30 = vadd.f32 1.0, %v2045_v14  ;;  %v1034_v46 = vadd.f32 %v2584_v45, %v989_v2 }
 0x24d   : > { %2060 = vpow2.f32 %v1124_v16  ;;  %v1069_v10 = vsub.f32 0.0, %v1037_v49  ;;  %v1247_v52 = vsub.f32 1.0, %v2643_v18  ;;  %v1064_v31 = vsub.f32 0.0, %v1032_v34  ;;  %v997_v49 = vpop.xlane.xlu0 %996 }
 0x24e   : > { %2062 = vrcp.f32 %v1157_v30  ;;  %v999_v53 = vpop.xlane.xlu1 %998  ;;  %v1066_v26 = vsub.f32 0.0, %v1034_v46  ;;  %v1036_v30 = vadd.f32 %v2584_v45, %v993_v38 }
 0x24f   : > { %v2049_v54 = vpop.eup %2048  ;;  %2064 = vpow2.f32 %v1098_v15  ;;  %v1128_v56 = vmul.f32 1.442695, %v1069_v10  ;;  %v1039_v57 = vadd.f32 %v2584_v45, %v999_v53  ;;  %1281 = vperm.xlu1 %1996, %v1236_v51   ;;  %1336 = vperm.xlu0 %1997, %v1247_v52   ;;  %v1240_v15 = vsub.f32 1.0, %v2632_v33 }
 0x250   : > { %v2649_v59 = vpop.eup %2050  ;;  %2066 = vpow2.f32 %v1102_v50  ;;  %v1159_v62 = vadd.f32 1.0, %v2049_v54  ;;  %v1118_v17 = vmul.f32 1.442695, %v1064_v31  ;;  %v1241_v33 = vsub.f32 1.0, %v2615_v58 }
 0x251   : > { %v2053_v63 = vpop.eup %2052  ;;  %2068 = vpow2.f32 %v1128_v56  ;;  %v1071_v61 = vsub.f32 0.0, %v1039_v57  ;;  %v1249_v1 = vsub.f32 1.0, %v2649_v59  ;;  %v1122_v56 = vmul.f32 1.442695, %v1066_v26 }
 0x252   : > { %2070 = vrcp.f32 %v1159_v62  ;;  %v1003_v3 = vpop.xlane.xlu1 %1002  ;;  %v1146_v13 = vadd.f32 1.0, %v2053_v63  ;;  %v1068_v57 = vsub.f32 0.0, %v1036_v30 }
 0x253   : > { %v2055_v5 = vpop.eup %2054  ;;  %v1132_v8 = vmul.f32 1.442695, %v1071_v61  ;;  %v1041_v11 = vadd.f32 %v2584_v45, %v1003_v3  ;;  %1286 = vperm.xlu1 %1996, %v1237_v0   ;;  %2072 = vpow2.f32 %v1106_v60  ;;  %1346 = vperm.xlu0 %1997, %v1249_v1   ;;  %v1038_v60 = vadd.f32 %v2584_v45, %v997_v49  ;;  %v1001_v61 = vpop.xlane.xlu0 %1000 }
 0x254   : > { %v2655_v12 = vpop.eup %2056  ;;  %v1161_v21 = vadd.f32 1.0, %v2055_v5  ;;  %v1126_v5 = vmul.f32 1.442695, %v1068_v57  ;;  %v1040_v7 = vadd.f32 %v2584_v45, %v1001_v61 }
 0x255   : > { %v2059_v32 = vpop.eup %2058  ;;  %2074 = vpow2.f32 %v1132_v8  ;;  %v1073_v22 = vsub.f32 0.0, %v1041_v11  ;;  %v1251_v24 = vsub.f32 1.0, %v2655_v12  ;;  %v1070_v6 = vsub.f32 0.0, %v1038_v60 }
 0x256   : > { %2076 = vrcp.f32 %v1161_v21  ;;  %v1148_v36 = vadd.f32 1.0, %v2059_v32 }
 0x257   : > { %v2061_v27 = vpop.eup %2060  ;;  %v1136_v35 = vmul.f32 1.442695, %v1073_v22  ;;  %1291 = vperm.xlu1 %1996, %v1238_v23   ;;  %2078 = vrcp.f32 %v1146_v13  ;;  %1356 = vperm.xlu0 %1997, %v1251_v24   ;;  %v1130_v23 = vmul.f32 1.442695, %v1070_v6  ;;  %v1072_v24 = vsub.f32 0.0, %v1040_v7 }
 0x258   : > { %v2660_v37 = vpop.eup %2062  ;;  %v1163_v39 = vadd.f32 1.0, %v2061_v27 }
 0x259   : > { %v2065_v40 = vpop.eup %2064  ;;  %2080 = vpow2.f32 %v1136_v35  ;;  %v1253_v41 = vsub.f32 1.0, %v2660_v37 }
 0x25a   : > { %v2067_v43 = vpop.eup %2066  ;;  %2082 = vrcp.f32 %v1163_v39  ;;  %v1150_v48 = vadd.f32 1.0, %v2065_v40 }
 0x25b   : > { %v2069_v19 = vpop.eup %2068  ;;  %2084 = vpow2.f32 %v1110_v28  ;;  %1296 = vperm.xlu1 %1996, %v1239_v9   ;;  %1366 = vperm.xlu0 %1997, %v1253_v41   ;;  %v1152_v51 = vadd.f32 1.0, %v2067_v43 }
 0x25c   : > { %v2665_v4 = vpop.eup %2070  ;;  %2086 = vrcp.f32 %v1148_v36  ;;  %v1165_v14 = vadd.f32 1.0, %v2069_v19  ;;  %v1134_v36 = vmul.f32 1.442695, %v1072_v24 }
 0x25d   : > { %v1255_v47 = vsub.f32 1.0, %v2665_v4  ;;  %v2073_v16 = vpop.eup %2072 }
 0x25e   : > { %2088 = vrcp.f32 %v1165_v14  ;;  %v1154_v63 = vadd.f32 1.0, %v2073_v16 }
 0x25f   : > { %v2075_v50 = vpop.eup %2074  ;;  %2090 = vpow2.f32 %v1114_v44  ;;  %1301 = vperm.xlu1 %1996, %v1240_v15   ;;  %1376 = vperm.xlu0 %1997, %v1255_v47  }
 0x260   : > { %v2670_v10 = vpop.eup %2076  ;;  %2092 = vrcp.f32 %v1150_v48  ;;  %v1167_v52 = vadd.f32 1.0, %v2075_v50 }
 0x261   : > { %v1257_v53 = vsub.f32 1.0, %v2670_v10  ;;  %v2674_v54 = vpop.eup %2078 }
 0x262   : > { %2094 = vrcp.f32 %v1167_v52  ;;  %v1242_v1 = vsub.f32 1.0, %v2674_v54 }
 0x263   : > { %v2081_v55 = vpop.eup %2080  ;;  %2096 = vpow2.f32 %v1118_v17  ;;  %1306 = vperm.xlu1 %1996, %v1241_v33   ;;  %1386 = vperm.xlu0 %1997, %v1257_v53  }
 0x264   : > { %v2677_v62 = vpop.eup %2082  ;;  %2098 = vrcp.f32 %v1152_v51  ;;  %v1169_v0 = vadd.f32 1.0, %v2081_v55 }
 0x265   : > { %v2085_v58 = vpop.eup %2084  ;;  %v1259_v2 = vsub.f32 1.0, %v2677_v62 }
 0x266   : > { %v2681_v3 = vpop.eup %2086  ;;  %2100 = vrcp.f32 %v1169_v0  ;;  %v1156_v11 = vadd.f32 1.0, %v2085_v58 }
 0x267   : > { %2102 = vpow2.f32 %v1122_v56  ;;  %1311 = vperm.xlu1 %1996, %v1242_v1   ;;  %1396 = vperm.xlu0 %1997, %v1259_v2   ;;  %v1244_v32 = vsub.f32 1.0, %v2681_v3 }
 0x268   : > { %v2684_v8 = vpop.eup %2088  ;;  %2104 = vrcp.f32 %v1154_v63 }
 0x269   : > { %v2091_v13 = vpop.eup %2090  ;;  %v1261_v21 = vsub.f32 1.0, %v2684_v8  ;;  %2106 = vpow2.f32 %v1126_v5 }
 0x26a   : > { %v2688_v22 = vpop.eup %2092  ;;  %2108 = vrcp.f32 %v1156_v11  ;;  %v1158_v45 = vadd.f32 1.0, %v2091_v13 }
 0x26b   : > { %1321 = vperm.xlu1 %1996, %v1244_v32   ;;  %1406 = vperm.xlu0 %1997, %v1261_v21   ;;  %v1246_v34 = vsub.f32 1.0, %v2688_v22  ;;  %2110 = vpow2.f32 %v1130_v23 }
 0x26c   : > { %v2690_v27 = vpop.eup %2094  ;;  %2112 = vrcp.f32 %v1158_v45 }
 0x26d   : > { %v2097_v28 = vpop.eup %2096  ;;  %v1263_v29 = vsub.f32 1.0, %v2690_v27  ;;  %2114 = vpow2.f32 %v1134_v36 }
 0x26e   : > { %v2694_v35 = vpop.eup %2098  ;;  %v1160_v39 = vadd.f32 1.0, %v2097_v28 }
 0x26f   : > { %1331 = vperm.xlu1 %1996, %v1246_v34   ;;  %1416 = vperm.xlu0 %1997, %v1263_v29   ;;  %v1248_v41 = vsub.f32 1.0, %v2694_v35 }
 0x270   : > { %v2101_v38 = vpop.eup %2100  ;;  %2116 = vrcp.f32 %v1160_v39 }
 0x271   : > { %v2103_v40 = vpop.eup %2102  ;;  %v1265_v9 = vsub.f32 1.0, %v2101_v38 }
 0x272   : > { %v2105_v43 = vpop.eup %2104  ;;  %v1162_v19 = vadd.f32 1.0, %v2103_v40 }
 0x273   : > { %1341 = vperm.xlu1 %1996, %v1248_v41   ;;  %1426 = vperm.xlu0 %1997, %v1265_v9   ;;  %v2107_v44 = vpop.eup %2106  ;;  %v1250_v31 = vsub.f32 1.0, %v2105_v43 }
 0x274   : > { %v2109_v46 = vpop.eup %2108  ;;  %2118 = vrcp.f32 %v1162_v19  ;;  %v1164_v48 = vadd.f32 1.0, %v2107_v44 }
 0x275   : > { %v2111_v14 = vpop.eup %2110  ;;  %v1252_v15 = vsub.f32 1.0, %v2109_v46 }
 0x276   : > { %v2113_v47 = vpop.eup %2112  ;;  %2120 = vrcp.f32 %v1164_v48  ;;  %v1166_v16 = vadd.f32 1.0, %v2111_v14 }
 0x277   : > { %1351 = vperm.xlu1 %1996, %v1250_v31   ;;  %1476 = vperm.xlu0 %1997, %v2629_v25   ;;  %v2115_v49 = vpop.eup %2114  ;;  %v1254_v50 = vsub.f32 1.0, %v2113_v47 }
 0x278   : > { %2122 = vrcp.f32 %v1166_v16  ;;  %v1168_v26 = vadd.f32 1.0, %v2115_v49 }
 0x27a   : > { %v2117_v17 = vpop.eup %2116  ;;  %2124 = vrcp.f32 %v1168_v26 }
 0x27b   : > { %1361 = vperm.xlu1 %1996, %v1252_v15   ;;  %1486 = vperm.xlu0 %1997, %v2637_v42   ;;  %v1256_v30 = vsub.f32 1.0, %v2117_v17 }
 0x27e   : > { %v2119_v51 = vpop.eup %2118 }
 0x27f   : > { %1371 = vperm.xlu1 %1996, %v1254_v50   ;;  %1496 = vperm.xlu0 %1997, %v2643_v18   ;;  %v1258_v25 = vsub.f32 1.0, %v2119_v51 }
 0x280   : > { %v2121_v52 = vpop.eup %2120 }
 0x281   : > { %v1260_v42 = vsub.f32 1.0, %v2121_v52 }
 0x282   : > { %v2123_v33 = vpop.eup %2122 }
 0x283   : > { %1381 = vperm.xlu1 %1996, %v1256_v30   ;;  %1506 = vperm.xlu0 %1997, %v2649_v59   ;;  %v1262_v53 = vsub.f32 1.0, %v2123_v33 }
 0x284   : > { %v2125_v55 = vpop.eup %2124 }
 0x285   : > { %v1264_v18 = vsub.f32 1.0, %v2125_v55 }
 0x287   : > { %1391 = vperm.xlu1 %1996, %v1258_v25   ;;  %1516 = vperm.xlu0 %1997, %v2655_v12  }
 0x28b   : > { %1401 = vperm.xlu1 %1996, %v1260_v42   ;;  %1526 = vperm.xlu0 %1997, %v2660_v37  }
 0x28f   : > { %1411 = vperm.xlu1 %1996, %v1262_v53   ;;  %1536 = vperm.xlu0 %1997, %v2665_v4  }
 0x293   : > { %1421 = vperm.xlu1 %1996, %v1264_v18   ;;  %1546 = vperm.xlu0 %1997, %v2670_v10   ;;  %v2713_v10 = vand.u32 127, %v904_v20 }
 0x295   : > { %vm1268_vm0 = vcmp.eq.s32.totalorder %v2713_v10, 0 }
 0x297   : > { %1471 = vperm.xlu1 %1996, %v2674_v54   ;;  %1556 = vperm.xlu0 %1997, %v2677_v62  }
 0x29b   : > { %1481 = vperm.xlu1 %1996, %v2681_v3   ;;  %1566 = vperm.xlu0 %1997, %v2684_v8  }
 0x29f   : > { %1491 = vperm.xlu1 %1996, %v2688_v22   ;;  %1576 = vperm.xlu0 %1997, %v2690_v27  }
 0x2a3   : > { %1501 = vperm.xlu1 %1996, %v2694_v35   ;;  %1586 = vperm.xlu0 %1997, %v2101_v38  }
 0x2a4   : > { %v1437_v59 = vpop.permute.xlu0 %1436 }
 0x2a7   : > { %1511 = vperm.xlu1 %1996, %v2105_v43  }
 0x2ab   : > { %1521 = vperm.xlu1 %1996, %v2109_v46  }
 0x2ac   : > { %v1447_v12 = vpop.permute.xlu0 %1446 }
 0x2af   : > { %1531 = vperm.xlu1 %1996, %v2113_v47  }
 0x2b3   : > { %1541 = vperm.xlu1 %1996, %v2117_v17  }
 0x2b4   : > { %v1457_v37 = vpop.permute.xlu0 %1456 }
 0x2b7   : > { %1551 = vperm.xlu1 %1996, %v2119_v51  }
 0x2ba   : > { %v1432_v4 = vpop.permute.xlu1 %1431 }
 0x2bb   : > { %1561 = vperm.xlu1 %1996, %v2121_v52  }
 0x2bc   : > { %v1467_v54 = vpop.permute.xlu0 %1466 }
 0x2be   : > { %v1442_v56 = vpop.permute.xlu1 %1441 }
 0x2bf   : > { %1571 = vperm.xlu1 %1996, %v2123_v33  }
 0x2c0   : > { %v1272_v57 = vpop.permute.xlu0 %1271 }
 0x2c1   : > { %v1589_v60 = vsel %vm1268_vm0, %v1272_v57, %v1432_v4 }
 0x2c2   : > { %1622 = vst.msk [vmem:[%s2387_s30] sm:$0xff] %vm1621_vm1, %v1589_v60  ;;  %v1452_v62 = vpop.permute.xlu1 %1451 }
 0x2c3   : > { %1581 = vperm.xlu1 %1996, %v2125_v55  }
 0x2c6   : > { %v1462_v20 = vpop.permute.xlu1 %1461  ;;  %v1317_v63 = vpop.permute.xlu0 %1316 }
 0x2ca   : > { %v1277_v61 = vpop.permute.xlu1 %1276  ;;  %v1327_v58 = vpop.permute.xlu0 %1326 }
 0x2cb   : > { %v1590_v0 = vsel %vm1268_vm0, %v1277_v61, %v1437_v59 }
 0x2cc   : > { %1623 = vst.msk [vmem:[%s2387_s30 + $0x8] sm:$0xff] %vm1621_vm1, %v1590_v0 }
 0x2ce   : > { %v1282_v1 = vpop.permute.xlu1 %1281  ;;  %v1337_v3 = vpop.permute.xlu0 %1336 }
 0x2cf   : > { %v1591_v2 = vsel %vm1268_vm0, %v1282_v1, %v1442_v56 }
 0x2d0   : > { %1624 = vst.msk [vmem:[%s2387_s30 + $0x10] sm:$0xff] %vm1621_vm1, %v1591_v2 }
 0x2d2   : > { %v1287_v5 = vpop.permute.xlu1 %1286  ;;  %v1347_v7 = vpop.permute.xlu0 %1346 }
 0x2d3   : > { %v1592_v6 = vsel %vm1268_vm0, %v1287_v5, %v1447_v12 }
 0x2d4   : > { %1625 = vst.msk [vmem:[%s2387_s30 + $0x18] sm:$0xff] %vm1621_vm1, %v1592_v6 }
 0x2d6   : > { %v1292_v8 = vpop.permute.xlu1 %1291  ;;  %v1357_v13 = vpop.permute.xlu0 %1356 }
 0x2d7   : > { %v1593_v11 = vsel %vm1268_vm0, %v1292_v8, %v1452_v62 }
 0x2d8   : > { %1626 = vst.msk [vmem:[%s2387_s30 + $0x20] sm:$0xff] %vm1621_vm1, %v1593_v11 }
 0x2da   : > { %v1297_v21 = vpop.permute.xlu1 %1296  ;;  %v1367_v22 = vpop.permute.xlu0 %1366 }
 0x2db   : > { %v1594_v32 = vsel %vm1268_vm0, %v1297_v21, %v1457_v37 }
 0x2dc   : > { %1627 = vst.msk [vmem:[%s2387_s30 + $0x28] sm:$0xff] %vm1621_vm1, %v1594_v32 }
 0x2de   : > { %v1302_v23 = vpop.permute.xlu1 %1301  ;;  %v1377_v27 = vpop.permute.xlu0 %1376 }
 0x2df   : > { %v1595_v24 = vsel %vm1268_vm0, %v1302_v23, %v1462_v20 }
 0x2e0   : > { %1628 = vst.msk [vmem:[%s2387_s30 + $0x30] sm:$0xff] %vm1621_vm1, %v1595_v24 }
 0x2e2   : > { %v1307_v45 = vpop.permute.xlu1 %1306  ;;  %v1387_v29 = vpop.permute.xlu0 %1386 }
 0x2e3   : > { %v1596_v28 = vsel %vm1268_vm0, %v1307_v45, %v1467_v54 }
 0x2e4   : > { %1629 = vst.msk [vmem:[%s2387_s30 + $0x38] sm:$0xff] %vm1621_vm1, %v1596_v28 }
 0x2e6   : > { %v1312_v34 = vpop.permute.xlu1 %1311  ;;  %v1397_v35 = vpop.permute.xlu0 %1396 }
 0x2ea   : > { %v1322_v36 = vpop.permute.xlu1 %1321  ;;  %v1407_v38 = vpop.permute.xlu0 %1406 }
 0x2ee   : > { %v1332_v39 = vpop.permute.xlu1 %1331  ;;  %v1417_v40 = vpop.permute.xlu0 %1416 }
 0x2f2   : > { %v1342_v9 = vpop.permute.xlu1 %1341  ;;  %v1427_v41 = vpop.permute.xlu0 %1426 }
 0x2f6   : > { %v1352_v43 = vpop.permute.xlu1 %1351  ;;  %v1477_v19 = vpop.permute.xlu0 %1476 }
 0x2f7   : > { %v1598_v44 = vsel %vm1268_vm0, %v1317_v63, %v1477_v19 }
 0x2f8   : > { %1631 = vst.msk [vmem:[%s2387_s30 + $0x48] sm:$0xff] %vm1621_vm1, %v1598_v44 }
 0x2fa   : > { %v1362_v31 = vpop.permute.xlu1 %1361  ;;  %v1487_v46 = vpop.permute.xlu0 %1486 }
 0x2fb   : > { %v1600_v48 = vsel %vm1268_vm0, %v1327_v58, %v1487_v46 }
 0x2fc   : > { %1633 = vst.msk [vmem:[%s2387_s30 + $0x58] sm:$0xff] %vm1621_vm1, %v1600_v48 }
 0x2fe   : > { %v1372_v14 = vpop.permute.xlu1 %1371  ;;  %v1497_v15 = vpop.permute.xlu0 %1496 }
 0x2ff   : > { %v1602_v47 = vsel %vm1268_vm0, %v1337_v3, %v1497_v15 }
 0x300   : > { %1635 = vst.msk [vmem:[%s2387_s30 + $0x68] sm:$0xff] %vm1621_vm1, %v1602_v47 }
 0x302   : > { %v1382_v16 = vpop.permute.xlu1 %1381  ;;  %v1507_v49 = vpop.permute.xlu0 %1506 }
 0x303   : > { %v1604_v50 = vsel %vm1268_vm0, %v1347_v7, %v1507_v49 }
 0x304   : > { %1637 = vst.msk [vmem:[%s2387_s30 + $0x78] sm:$0xff] %vm1621_vm1, %v1604_v50 }
 0x306   : > { %v1392_v17 = vpop.permute.xlu1 %1391  ;;  %v1517_v26 = vpop.permute.xlu0 %1516 }
 0x307   : > { %v1606_v30 = vsel %vm1268_vm0, %v1357_v13, %v1517_v26 }
 0x308   : > { %1639 = vst.msk [vmem:[%s2387_s30 + $0x88] sm:$0xff] %vm1621_vm1, %v1606_v30 }
 0x30a   : > { %v1402_v51 = vpop.permute.xlu1 %1401  ;;  %v1527_v25 = vpop.permute.xlu0 %1526 }
 0x30b   : > { %v1608_v52 = vsel %vm1268_vm0, %v1367_v22, %v1527_v25 }
 0x30c   : > { %1641 = vst.msk [vmem:[%s2387_s30 + $0x98] sm:$0xff] %vm1621_vm1, %v1608_v52 }
 0x30e   : > { %v1412_v42 = vpop.permute.xlu1 %1411  ;;  %v1537_v33 = vpop.permute.xlu0 %1536 }
 0x30f   : > { %v1610_v53 = vsel %vm1268_vm0, %v1377_v27, %v1537_v33 }
 0x310   : > { %1643 = vst.msk [vmem:[%s2387_s30 + $0xa8] sm:$0xff] %vm1621_vm1, %v1610_v53 }
 0x312   : > { %v1422_v55 = vpop.permute.xlu1 %1421  ;;  %v1547_v18 = vpop.permute.xlu0 %1546 }
 0x313   : > { %v1612_v59 = vsel %vm1268_vm0, %v1387_v29, %v1547_v18 }
 0x314   : > { %1645 = vst.msk [vmem:[%s2387_s30 + $0xb8] sm:$0xff] %vm1621_vm1, %v1612_v59 }
 0x316   : > { %v1472_v12 = vpop.permute.xlu1 %1471  ;;  %v1557_v4 = vpop.permute.xlu0 %1556 }
 0x317   : > { %v1597_v37 = vsel %vm1268_vm0, %v1312_v34, %v1472_v12  ;;  %v1614_v54 = vsel %vm1268_vm0, %v1397_v35, %v1557_v4 }
 0x318   : > { %1630 = vst.msk [vmem:[%s2387_s30 + $0x40] sm:$0xff] %vm1621_vm1, %v1597_v37  ;;  %1647 = vst.msk [vmem:[%s2387_s30 + $0xc8] sm:$0xff] %vm1621_vm1, %v1614_v54 }
 0x31a   : > { %v1482_v56 = vpop.permute.xlu1 %1481  ;;  %v1567_v60 = vpop.permute.xlu0 %1566 }
 0x31b   : > { %v1599_v57 = vsel %vm1268_vm0, %v1322_v36, %v1482_v56  ;;  %v1616_v62 = vsel %vm1268_vm0, %v1407_v38, %v1567_v60 }
 0x31c   : > { %1632 = vst.msk [vmem:[%s2387_s30 + $0x50] sm:$0xff] %vm1621_vm1, %v1599_v57  ;;  %1649 = vst.msk [vmem:[%s2387_s30 + $0xd8] sm:$0xff] %vm1621_vm1, %v1616_v62 }
 0x31e   : > { %v1492_v20 = vpop.permute.xlu1 %1491  ;;  %v1577_v61 = vpop.permute.xlu0 %1576 }
 0x31f   : > { %v1601_v63 = vsel %vm1268_vm0, %v1332_v39, %v1492_v20  ;;  %v1618_v0 = vsel %vm1268_vm0, %v1417_v40, %v1577_v61 }
 0x320   : > { %1634 = vst.msk [vmem:[%s2387_s30 + $0x60] sm:$0xff] %vm1621_vm1, %v1601_v63  ;;  %1651 = vst.msk [vmem:[%s2387_s30 + $0xe8] sm:$0xff] %vm1621_vm1, %v1618_v0 }
 0x322   : > { %v1502_v58 = vpop.permute.xlu1 %1501  ;;  %v1587_v2 = vpop.permute.xlu0 %1586 }
 0x323   : > { %v1603_v1 = vsel %vm1268_vm0, %v1342_v9, %v1502_v58  ;;  %v1620_v3 = vsel %vm1268_vm0, %v1427_v41, %v1587_v2 }
 0x324   : > { %1636 = vst.msk [vmem:[%s2387_s30 + $0x70] sm:$0xff] %vm1621_vm1, %v1603_v1  ;;  %1653 = vst.msk [vmem:[%s2387_s30 + $0xf8] sm:$0xff] %vm1621_vm1, %v1620_v3 }
 0x326   : > { %v1512_v5 = vpop.permute.xlu1 %1511 }
 0x327   : > { %v1605_v6 = vsel %vm1268_vm0, %v1352_v43, %v1512_v5 }
 0x328   : > { %1638 = vst.msk [vmem:[%s2387_s30 + $0x80] sm:$0xff] %vm1621_vm1, %v1605_v6 }
 0x32a   : > { %v1522_v7 = vpop.permute.xlu1 %1521 }
 0x32b   : > { %v1607_v8 = vsel %vm1268_vm0, %v1362_v31, %v1522_v7 }
 0x32c   : > { %1640 = vst.msk [vmem:[%s2387_s30 + $0x90] sm:$0xff] %vm1621_vm1, %v1607_v8 }
 0x32e   : > { %v1532_v11 = vpop.permute.xlu1 %1531 }
 0x32f   : > { %v1609_v13 = vsel %vm1268_vm0, %v1372_v14, %v1532_v11 }
 0x330   : > { %1642 = vst.msk [vmem:[%s2387_s30 + $0xa0] sm:$0xff] %vm1621_vm1, %v1609_v13 }
 0x332   : > { %v1542_v21 = vpop.permute.xlu1 %1541 }
 0x333   : > { %v1611_v32 = vsel %vm1268_vm0, %v1382_v16, %v1542_v21 }
 0x334   : > { %1644 = vst.msk [vmem:[%s2387_s30 + $0xb0] sm:$0xff] %vm1621_vm1, %v1611_v32 }
 0x336   : > { %v1552_v22 = vpop.permute.xlu1 %1551 }
 0x337   : > { %v1613_v23 = vsel %vm1268_vm0, %v1392_v17, %v1552_v22 }
 0x338   : > { %1646 = vst.msk [vmem:[%s2387_s30 + $0xc0] sm:$0xff] %vm1621_vm1, %v1613_v23 }
 0x33a   : > { %v1562_v24 = vpop.permute.xlu1 %1561 }
 0x33b   : > { %v1615_v27 = vsel %vm1268_vm0, %v1402_v51, %v1562_v24 }
 0x33c   : > { %1648 = vst.msk [vmem:[%s2387_s30 + $0xd0] sm:$0xff] %vm1621_vm1, %v1615_v27 }
 0x33e   : > { %v1572_v45 = vpop.permute.xlu1 %1571 }
 0x33f   : > { %v1617_v28 = vsel %vm1268_vm0, %v1412_v42, %v1572_v45 }
 0x340   : > { %1650 = vst.msk [vmem:[%s2387_s30 + $0xe0] sm:$0xff] %vm1621_vm1, %v1617_v28 }
 0x342   : > { %v1582_v29 = vpop.permute.xlu1 %1581 }
 0x343   : > { %v1619_v34 = vsel %vm1268_vm0, %v1422_v55, %v1582_v29 }
 0x344   : > { %1652 = vst.msk [vmem:[%s2387_s30 + $0xf0] sm:$0xff] %vm1621_vm1, %v1619_v34 }
 0x345 PF: > { %s18_s25 = sadd.s32 1, %s2222_s25   ;;  %s2882_s17 = sld [smem:[#allocation6_spill]] }
 0x346   : > { %p15_p6 = scmp.ge.s32.totalorder %s18_s25, 6   ;;  %s2883_s18 = smov %s2198_s19 }
 0x347   : > { %s2884_s19 = smov %s2202_s20  ;;  %s2885_s20 = smov %s2328_s13 }
 0x348   : > { %s2886_s21 = smov %s2214_s23  ;;  %s2887_s22 = smov %s2218_s24 }
 0x349   : > { %s2889_s24 = smov %s2895_s28  ;;  %17 = sbr.rel (!%p15_p6) target bundleno = 7 (0x7), region = 89 }
 0x34b   : > { %s2888_s23 = smov %s2882_s17 }
 0x350   :  { %1676 = vsyncpa [#allocation4], 1 }
 0x351   :  { %1678 = vsyncpa [#allocation4 + $0x1], 1 }

</bundles_post_ra>
